<compile_context>
chip_gen: v5e
topology: v5e:2x2
jax: 0.10.0
libtpu: 0.0.40
codegen_flags: <defaults>
</compile_context>

<pallas_src>
import jax
import jax.numpy as jnp
from jax.experimental import pallas as pl
from jax.experimental.pallas import tpu as pltpu

# ----- small config (use_image=False -> mlp: Linear(d_model, d_model)) -----
D_MODEL = 32          # config.d_model
D_IN = D_MODEL        # would be 2048 if config.use_image=True
NUM_HEADS = 4         # config.encoder_attention_heads
HEAD_DIM = D_MODEL // NUM_HEADS
SCALING = HEAD_DIM ** -0.5
B = 2                 # batch
L_KV = 16             # length of `hidden_states` (keys/values after mlp)
L_Q = 8               # length of `encoder_hidden_states` (queries)


def pack_params(params):
    """One-time algebraic fusion & packing (hoisted out of the per-call path).

    * mlp folded into K/V projections:  Wk' = Wm@Wk, bk' = bm@Wk + bk (same for V)
    * 1/sqrt(head_dim) query scaling folded into Wq / bq
    * all biases + gate weights packed one-per-sublane-row into an (8, 3*D) matrix
    """
    D = D_MODEL
    d_in = params["wm"].shape[0]
    assert d_in == D, "w_slab packing assumes d_in == d_model (use_image=False path)"

    wq_s = params["wq"] * SCALING
    bq_s = params["bq"] * SCALING
    wk_f = params["wm"] @ params["wk"]
    bk_f = params["bm"] @ params["wk"] + params["bk"]
    wv_f = params["wm"] @ params["wv"]
    bv_f = params["bm"] @ params["wv"] + params["bv"]

    w_slab = jnp.concatenate([wq_s, wk_f, wv_f], axis=1)            # (D_IN, 3*D)

    proj_bias = jnp.concatenate([bq_s, bk_f, bv_f], axis=1)[0]      # (3*D,)
    bias_mat = jnp.zeros((8, 3 * D), jnp.float32)
    bias_mat = bias_mat.at[0, :].set(proj_bias)                     # row 0: q|k|v bias
    bias_mat = bias_mat.at[1, :D].set(params["bo"][0])              # row 1: out-proj bias
    bias_mat = bias_mat.at[2, :D].set(params["w1"][:, 0])           # row 2: gate w1 (row)
    bias_mat = bias_mat.at[3, :D].set(params["w2"][:, 0])           # row 3: gate w2 (row)
    bias_mat = bias_mat.at[4, 0].set(params["b1"][0, 0] + params["b2"][0, 0])  # gate bias

    return dict(w_slab=w_slab, wo=params["wo"], bias_mat=bias_mat)


def mm_transformer_encoder_layer(hidden_states, encoder_hidden_states, packed):
    """hidden_states: (B, L_KV, D_IN), encoder_hidden_states: (B, L_Q, D_MODEL)."""
    bsz, l_kv, d_in = hidden_states.shape
    _, l_q, d = encoder_hidden_states.shape
    h = NUM_HEADS
    hd = d // h
    n_q = bsz * l_q
    n_kv = bsz * l_kv

    def kernel(enc_ref, hid_ref, w_slab_ref, wo_ref, bias_ref, out_ref):
        enc2 = enc_ref[...]                                   # (B*L_Q, D)
        hid2 = hid_ref[...]                                   # (B*L_KV, D_IN)

        # ONE fused MXU matmul for q and K|V over the whole batch (sublane-axis stack;
        # cross-term columns of the result are never read). Bias is one broadcast row.
        stacked = jnp.concatenate([enc2, hid2], axis=0)       # (n_q + n_kv, D)
        proj = jnp.dot(stacked, w_slab_ref[...],
                       preferred_element_type=jnp.float32)    # (n_q + n_kv, 3*D)
        proj = proj + bias_ref[0:1, :]                        # fused q|k|v bias row

        q2 = proj[0:n_q, 0:d]                                 # (B*L_Q, D)
        k2 = proj[n_q:n_q + n_kv, d:2 * d]                    # (B*L_KV, D)
        v2 = proj[n_q:n_q + n_kv, 2 * d:3 * d]                # (B*L_KV, D)

        # single reshape+transpose head routing (one relayout per tensor)
        def to_heads(x2, l):
            return x2.reshape(bsz, l, h, hd).transpose(2, 0, 1, 3).reshape(h * bsz, l, hd)

        qh = to_heads(q2, l_q)                                # (H*B, L_Q, Hd)
        kh = to_heads(k2, l_kv)                               # (H*B, L_KV, Hd)
        vh = to_heads(v2, l_kv)

        # batched attention over all (head, batch) pairs in two einsums
        s = jnp.einsum('xqd,xkd->xqk', qh, kh, preferred_element_type=jnp.float32)
        s = s - jnp.max(s, axis=-1, keepdims=True)
        p = jnp.exp(s)
        p = p * pl.reciprocal(jnp.sum(p, axis=-1, keepdims=True), approx=True)  # EUP vrcp
        # TODO(synk): attention dropout skipped (inference / training=False)
        o = jnp.einsum('xqk,xkd->xqd', p, vh, preferred_element_type=jnp.float32)

        # re-pack heads onto lanes, then ONE (B*L_Q, D) @ (D, D) out-projection matmul
        o2 = o.reshape(h, bsz, l_q, hd).transpose(1, 2, 0, 3).reshape(n_q, d)
        attn = jnp.dot(o2, wo_ref[...], preferred_element_type=jnp.float32)
        attn = attn + bias_ref[1:2, 0:d]                      # out-proj bias (sublane row)

        # sigmoid gate on the VPU: broadcast-mul + lane reduction (no N=1 MXU matmuls)
        w1r = bias_ref[2:3, 0:d]
        w2r = bias_ref[3:4, 0:d]
        bg = bias_ref[4:5, 0:1]
        glogit = jnp.sum(attn * w1r + enc2 * w2r, axis=-1, keepdims=True) + bg
        g = jax.nn.sigmoid(glogit)                            # (B*L_Q, 1)

        out_ref[...] = enc2 + g * attn                        # (B*L_Q, D)

    enc2 = encoder_hidden_states.reshape(n_q, d)              # free leading-dim merges
    hid2 = hidden_states.reshape(n_kv, d_in)

    vmem = pl.BlockSpec(memory_space=pltpu.MemorySpace.VMEM)
    out2 = pl.pallas_call(
        kernel,
        out_shape=jax.ShapeDtypeStruct((n_q, d), jnp.float32),
        in_specs=[vmem, vmem, vmem, vmem, vmem],
        out_specs=vmem,
        cost_estimate=pl.CostEstimate(
            flops=400_000, transcendentals=1_100, bytes_accessed=28_000),
    )(enc2, hid2, packed["w_slab"], packed["wo"], packed["bias_mat"])
    return out2.reshape(bsz, l_q, d)


def _init_params(key):
    """Deterministic synthetic parameters.  Linear weights stored as (in, out)."""
    ks = jax.random.split(key, 14)

    def w(k, shape):
        return (0.02 * jax.random.normal(k, shape)).astype(jnp.float32)

    return dict(
        wm=w(ks[0], (D_IN, D_MODEL)),     bm=w(ks[1], (1, D_MODEL)),
        wq=w(ks[2], (D_MODEL, D_MODEL)),  bq=w(ks[3], (1, D_MODEL)),
        wk=w(ks[4], (D_MODEL, D_MODEL)),  bk=w(ks[5], (1, D_MODEL)),
        wv=w(ks[6], (D_MODEL, D_MODEL)),  bv=w(ks[7], (1, D_MODEL)),
        wo=w(ks[8], (D_MODEL, D_MODEL)),  bo=w(ks[9], (1, D_MODEL)),
        w1=w(ks[10], (D_MODEL, 1)),       b1=w(ks[11], (1, 1)),
        w2=w(ks[12], (D_MODEL, 1)),       b2=w(ks[13], (1, 1)),
    )


def _reference(hid, enc, p):
    """Pure-JAX reference of the PyTorch forward (inference, unfused weights)."""
    kv = hid @ p["wm"] + p["bm"]
    q = (enc @ p["wq"] + p["bq"]) * SCALING
    k = kv @ p["wk"] + p["bk"]
    v = kv @ p["wv"] + p["bv"]
    bsz = hid.shape[0]
    qh = q.reshape(bsz, L_Q, NUM_HEADS, HEAD_DIM).transpose(0, 2, 1, 3)
    kh = k.reshape(bsz, L_KV, NUM_HEADS, HEAD_DIM).transpose(0, 2, 1, 3)
    vh = v.reshape(bsz, L_KV, NUM_HEADS, HEAD_DIM).transpose(0, 2, 1, 3)
    s = jnp.einsum("bhqd,bhkd->bhqk", qh, kh)
    w = jax.nn.softmax(s, axis=-1)
    a = jnp.einsum("bhqk,bhkd->bhqd", w, vh)
    a = a.transpose(0, 2, 1, 3).reshape(bsz, L_Q, D_MODEL)
    attn = a @ p["wo"] + p["bo"]
    gate = jax.nn.sigmoid(attn @ p["w1"] + p["b1"] + enc @ p["w2"] + p["b2"])
    return enc + gate * attn


if __name__ == "__main__":
    key = jax.random.PRNGKey(0)
    k_hid, k_enc, k_par = jax.random.split(key, 3)

    hidden_states = jax.random.normal(k_hid, (B, L_KV, D_IN), dtype=jnp.float32)
    encoder_hidden_states = jax.random.normal(k_enc, (B, L_Q, D_MODEL), dtype=jnp.float32)
    params = _init_params(k_par)

    # one-time packing (hoisted out of the per-call path)
    packed = pack_params(params)

    layer = jax.jit(mm_transformer_encoder_layer)
    out = layer(hidden_states, encoder_hidden_states, packed)
    out = jax.block_until_ready(out)

    ref = _reference(hidden_states, encoder_hidden_states, params)
    assert out.shape == (B, L_Q, D_MODEL)
    assert jnp.allclose(out, ref, atol=2e-3, rtol=2e-3), "mismatch vs pure-JAX reference"

    print("KERNEL_OK")
</pallas_src>

<mosaic_0001>
module attributes {stable_mosaic.version = 11 : i64} {
  func.func @kernel(%arg0: memref<16x32xf32, #tpu.memory_space<vmem>>, %arg1: memref<32x32xf32, #tpu.memory_space<vmem>>, %arg2: memref<32x96xf32, #tpu.memory_space<vmem>>, %arg3: memref<32x32xf32, #tpu.memory_space<vmem>>, %arg4: memref<8x96xf32, #tpu.memory_space<vmem>>, %arg5: memref<16x32xf32, #tpu.memory_space<vmem>>) attributes {dimension_semantics = [], scalar_prefetch = 0 : i64, scratch_operands = 0 : i64, tpu.core_type = #tpu.core_type<tc>} {
    %c0 = arith.constant 0 : index
    %c0_0 = arith.constant 0 : index
    %0 = vector.load %arg0[%c0, %c0_0] : memref<16x32xf32, #tpu.memory_space<vmem>>, vector<16x32xf32>
    %c0_1 = arith.constant 0 : index
    %c0_2 = arith.constant 0 : index
    %1 = vector.load %arg1[%c0_1, %c0_2] : memref<32x32xf32, #tpu.memory_space<vmem>>, vector<32x32xf32>
    %2 = tpu.concatenate %0, %1 in 0 : vector<16x32xf32>, vector<32x32xf32> -> vector<48x32xf32>
    %c0_3 = arith.constant 0 : index
    %c0_4 = arith.constant 0 : index
    %3 = vector.load %arg2[%c0_3, %c0_4] : memref<32x96xf32, #tpu.memory_space<vmem>>, vector<32x96xf32>
    %cst = arith.constant dense<0.000000e+00> : vector<48x96xf32>
    %4 = tpu.matmul %2, %3, %cst {dimension_numbers = #tpu.dot_dimension_numbers<[1], [0], [0], [1], [0, 0, 1, 1], [], []>} : vector<48x32xf32>, vector<32x96xf32>, vector<48x96xf32> -> vector<48x96xf32>
    %c0_5 = arith.constant 0 : index
    %c0_6 = arith.constant 0 : index
    %5 = vector.load %arg4[%c0_5, %c0_6] : memref<8x96xf32, #tpu.memory_space<vmem>>, vector<1x96xf32>
    %6 = vector.broadcast %5 : vector<1x96xf32> to vector<48x96xf32>
    %7 = arith.addf %4, %6 : vector<48x96xf32>
    %8 = vector.extract_strided_slice %7 {offsets = [0, 0], sizes = [16, 32], strides = [1, 1]} : vector<48x96xf32> to vector<16x32xf32>
    %9 = vector.extract_strided_slice %7 {offsets = [16, 32], sizes = [32, 32], strides = [1, 1]} : vector<48x96xf32> to vector<32x32xf32>
    %10 = vector.extract_strided_slice %7 {offsets = [16, 64], sizes = [32, 32], strides = [1, 1]} : vector<48x96xf32> to vector<32x32xf32>
    %11 = vector.shape_cast %8 : vector<16x32xf32> to vector<2x8x4x8xf32>
    %12 = tpu.transpose %11, [2, 0, 1, 3] : vector<2x8x4x8xf32> -> vector<4x2x8x8xf32>
    %13 = vector.shape_cast %12 : vector<4x2x8x8xf32> to vector<8x8x8xf32>
    %14 = vector.shape_cast %9 : vector<32x32xf32> to vector<2x16x4x8xf32>
    %15 = tpu.transpose %14, [2, 0, 1, 3] : vector<2x16x4x8xf32> -> vector<4x2x16x8xf32>
    %16 = vector.shape_cast %15 : vector<4x2x16x8xf32> to vector<8x16x8xf32>
    %17 = vector.shape_cast %10 : vector<32x32xf32> to vector<2x16x4x8xf32>
    %18 = tpu.transpose %17, [2, 0, 1, 3] : vector<2x16x4x8xf32> -> vector<4x2x16x8xf32>
    %19 = vector.shape_cast %18 : vector<4x2x16x8xf32> to vector<8x16x8xf32>
    "tpu.trace_start"() <{level = 10 : i32, message = "xqd,xkd->xqk"}> : () -> ()
    %cst_7 = arith.constant dense<0.000000e+00> : vector<8x8x16xf32>
    %20 = tpu.matmul %13, %16, %cst_7 {dimension_numbers = #tpu.dot_dimension_numbers<[2], [2], [1], [1], [0, 0, 0, 1, 1, 1], [0], [0]>} : vector<8x8x8xf32>, vector<8x16x8xf32>, vector<8x8x16xf32> -> vector<8x8x16xf32>
    "tpu.trace_stop"() : () -> ()
    %cst_8 = arith.constant dense<0xFF800000> : vector<8x8xf32>
    %21 = vector.multi_reduction <maximumf>, %20, %cst_8 [2] : vector<8x8x16xf32> to vector<8x8xf32>
    %22 = vector.shape_cast %21 : vector<8x8xf32> to vector<8x8x1xf32>
    %23 = vector.broadcast %22 : vector<8x8x1xf32> to vector<8x8x16xf32>
    %24 = arith.subf %20, %23 : vector<8x8x16xf32>
    %25 = math.exp %24 : vector<8x8x16xf32>
    %cst_9 = arith.constant dense<0.000000e+00> : vector<8x8xf32>
    %26 = vector.multi_reduction <add>, %25, %cst_9 [2] : vector<8x8x16xf32> to vector<8x8xf32>
    %27 = vector.shape_cast %26 : vector<8x8xf32> to vector<8x8x1xf32>
    %28 = tpu.reciprocal %27 {approx = true} : vector<8x8x1xf32> -> vector<8x8x1xf32>
    %29 = vector.broadcast %28 : vector<8x8x1xf32> to vector<8x8x16xf32>
    %30 = arith.mulf %25, %29 : vector<8x8x16xf32>
    "tpu.trace_start"() <{level = 10 : i32, message = "xqk,xkd->xqd"}> : () -> ()
    %cst_10 = arith.constant dense<0.000000e+00> : vector<8x8x8xf32>
    %31 = tpu.matmul %30, %19, %cst_10 {dimension_numbers = #tpu.dot_dimension_numbers<[2], [1], [1], [2], [0, 0, 0, 1, 1, 2], [0], [0]>} : vector<8x8x16xf32>, vector<8x16x8xf32>, vector<8x8x8xf32> -> vector<8x8x8xf32>
    "tpu.trace_stop"() : () -> ()
    %32 = vector.shape_cast %31 : vector<8x8x8xf32> to vector<4x2x8x8xf32>
    %33 = tpu.transpose %32, [1, 2, 0, 3] : vector<4x2x8x8xf32> -> vector<2x8x4x8xf32>
    %34 = vector.shape_cast %33 : vector<2x8x4x8xf32> to vector<16x32xf32>
    %c0_11 = arith.constant 0 : index
    %c0_12 = arith.constant 0 : index
    %35 = vector.load %arg3[%c0_11, %c0_12] : memref<32x32xf32, #tpu.memory_space<vmem>>, vector<32x32xf32>
    %cst_13 = arith.constant dense<0.000000e+00> : vector<16x32xf32>
    %36 = tpu.matmul %34, %35, %cst_13 {dimension_numbers = #tpu.dot_dimension_numbers<[1], [0], [0], [1], [0, 0, 1, 1], [], []>} : vector<16x32xf32>, vector<32x32xf32>, vector<16x32xf32> -> vector<16x32xf32>
    %c1 = arith.constant 1 : index
    %c0_14 = arith.constant 0 : index
    %37 = vector.load %arg4[%c1, %c0_14] : memref<8x96xf32, #tpu.memory_space<vmem>>, vector<1x32xf32>
    %38 = vector.broadcast %37 : vector<1x32xf32> to vector<16x32xf32>
    %39 = arith.addf %36, %38 : vector<16x32xf32>
    %c2 = arith.constant 2 : index
    %c0_15 = arith.constant 0 : index
    %40 = vector.load %arg4[%c2, %c0_15] : memref<8x96xf32, #tpu.memory_space<vmem>>, vector<1x32xf32>
    %c3 = arith.constant 3 : index
    %c0_16 = arith.constant 0 : index
    %41 = vector.load %arg4[%c3, %c0_16] : memref<8x96xf32, #tpu.memory_space<vmem>>, vector<1x32xf32>
    %c4 = arith.constant 4 : index
    %c0_17 = arith.constant 0 : index
    %42 = vector.load %arg4[%c4, %c0_17] : memref<8x96xf32, #tpu.memory_space<vmem>>, vector<1x1xf32>
    %43 = vector.broadcast %40 : vector<1x32xf32> to vector<16x32xf32>
    %44 = arith.mulf %39, %43 : vector<16x32xf32>
    %45 = vector.broadcast %41 : vector<1x32xf32> to vector<16x32xf32>
    %46 = arith.mulf %0, %45 : vector<16x32xf32>
    %47 = arith.addf %44, %46 : vector<16x32xf32>
    %cst_18 = arith.constant dense<0.000000e+00> : vector<16xf32>
    %48 = vector.multi_reduction <add>, %47, %cst_18 [1] : vector<16x32xf32> to vector<16xf32>
    %49 = vector.shape_cast %48 : vector<16xf32> to vector<16x1xf32>
    %50 = vector.broadcast %42 : vector<1x1xf32> to vector<16x1xf32>
    %51 = arith.addf %49, %50 : vector<16x1xf32>
    %52 = arith.negf %51 : vector<16x1xf32>
    %53 = math.exp %52 : vector<16x1xf32>
    %cst_19 = arith.constant 1.000000e+00 : f32
    %54 = vector.broadcast %cst_19 : f32 to vector<16x1xf32>
    %55 = arith.addf %54, %53 : vector<16x1xf32>
    %56 = arith.divf %54, %55 : vector<16x1xf32>
    %57 = vector.broadcast %56 : vector<16x1xf32> to vector<16x32xf32>
    %58 = arith.mulf %57, %39 : vector<16x32xf32>
    %59 = arith.addf %0, %58 : vector<16x32xf32>
    %c0_20 = arith.constant 0 : index
    %c0_21 = arith.constant 0 : index
    %60 = vector.load %arg5[%c0_20, %c0_21] : memref<16x32xf32, #tpu.memory_space<vmem>>, vector<16x32xf32>
    tpu.vector_store %arg5[%c0_20, %c0_21], %59 {strides = array<i32>} : memref<16x32xf32, #tpu.memory_space<vmem>>, vector<16x32xf32>,
    return
  }
}

</mosaic_0001>

<bundles_post_ra>
// kernel: mm_transformer_encoder_layer.1
= control target key start
LH: loop header
LB: loop body
LE: loop exit
PB: predicated region body
PF: predicated region fallthrough
CT: control target
= control target key end

     0   :  { %10 = vsyncpa [#allocation3], 0  ;;  %s3658_s0 = inlined_call_operand.hbm [shape: f32[16,32], index: 0, kind: input, shape index: {}]   ;;  %s3659_s1 = inlined_call_operand.hbm [shape: f32[32,32], index: 1, kind: input, shape index: {}]   ;;  %s3660_s2 = inlined_call_operand.hbm [shape: f32[32,96], index: 2, kind: input, shape index: {}]   ;;  %s3661_s3 = inlined_call_operand.hbm [shape: f32[32,32], index: 3, kind: input, shape index: {}]   ;;  %s3662_s4 = inlined_call_operand.hbm [shape: f32[8,96], index: 4, kind: input, shape index: {}]   ;;  %s3663_s5 = inlined_call_operand.hbm [shape: f32[16,32], index: 5, kind: output, shape index: {}]  }
   0x1   :  { %11 = vsyncpa [#allocation6], 0 }
   0x2   :  { %12 = vsyncpa [#allocation9], 0 }
   0x3   :  { %13 = vsyncpa [#allocation4], 0  ;;  %s31_s20 = sshll.u32 %s3659_s1, 4  ;;  %s2596_s21 = smov [#allocation5]   ;;  %s32_s20 = int_to_ptr.hbm [resolvable:$true] %s31_s20 }
   0x4   :  { %s33_s22 = sshll.u32 %s2596_s21, 4  ;;  %s57_s25 = sshll.u32 %s3661_s3, 4  ;;  %s34_s22 = int_to_ptr.vmem [resolvable:$true] %s33_s22  ;;  %s58_s25 = int_to_ptr.hbm [resolvable:$true] %s57_s25 }
   0x5   :  { %s2597_s26 = smov 128   ;;  %s2598_s27 = smov 8  }
   0x6   :  { %39 = dma.hbm_to_vmem [thread:$0]  %s32_s20, 512, %s34_s22, [#allocation6], %s2597_s26, %s2597_s26, %s2598_s27  }
   0x7   :  { %s2599_s28 = smov [#allocation8]   ;;  %s18_s1 = sshll.u32 %s3658_s0, 4  ;;  %s19_s1 = int_to_ptr.hbm [resolvable:$true] %s18_s1 }
   0x8   :  { %s59_s29 = sshll.u32 %s2599_s28, 4  ;;  %s44_s8 = sshll.u32 %s3660_s2, 4  ;;  %s60_s29 = int_to_ptr.vmem [resolvable:$true] %s59_s29  ;;  %s45_s8 = int_to_ptr.hbm [resolvable:$true] %s44_s8 }
   0x9   :  { %65 = dma.hbm_to_vmem [thread:$0]  %s58_s25, 512, %s60_s29, [#allocation9], %s2597_s26, %s2597_s26, %s2598_s27  }
   0xa   :  { %s2600_s9 = smov [#allocation2]   ;;  %s2601_s11 = smov [#allocation7]  }
   0xb   :  { %s20_s10 = sshll.u32 %s2600_s9, 4  ;;  %s46_s0 = sshll.u32 %s2601_s11, 4  ;;  %s21_s10 = int_to_ptr.vmem [resolvable:$true] %s20_s10  ;;  %s47_s0 = int_to_ptr.vmem [resolvable:$true] %s46_s0 }
   0xc   :  { %26 = dma.hbm_to_vmem [thread:$0]  %s19_s1, 256, %s21_s10, [#allocation3], %s2597_s26, %s2597_s26, %s2598_s27  }
   0xd   :  { %s71_s14 = sshll.u32 %s3662_s4, 4  ;;  %s2602_s2 = smov [#allocation10]   ;;  %s72_s14 = int_to_ptr.hbm [resolvable:$true] %s71_s14 }
   0xe   :  { %52 = dma.hbm_to_vmem [thread:$0]  %s45_s8, 512, %s47_s0, [#allocation6], %s2597_s26, %s2597_s26, %s2598_s27  }
   0xf   :  { %s73_s15 = sshll.u32 %s2602_s2, 4  ;;  %s74_s15 = int_to_ptr.vmem [resolvable:$true] %s73_s15 }
  0x10   :  { %76 = dma.hbm_to_vmem [thread:$0]  %s72_s14, 128, %s74_s15, [#allocation9]  }
  0x11   :  { %2588 = dma.done.wait [#allocation3], 256  }
  0x12   :  { %2589 = vsyncadd [#allocation3], 4294967040 }
  0x13   :  { %2590 = dma.done.wait [#allocation6], 1024  }
  0x14   :  { %2591 = vsyncadd [#allocation6], 4294966272 }
  0x15   :  { %2592 = dma.done.wait [#allocation9], 640  }
  0x16   :  { %2593 = vsyncadd [#allocation9], 4294966656  ;;  %v106_v0 = vld [vmem:[#allocation7 + $0x18] sm:$0xff]  ;;  %v105_v1 = vld [vmem:[#allocation7 + $0x10] sm:$0xff]  ;;  %vm109_vm0 = vcmask 261120   ;;  %s2603_s4 = smov 104  }
  0x17   :  { %140 = vmatpush.msra.mxu0 %v106_v0  ;;  %v104_v2 = vld [vmem:[#allocation7 + $0x8] sm:$0xff]  ;;  %v103_v3 = vld [vmem:[#allocation7] sm:$0xff]  ;;  %v97_v4 = vld [vmem:[#allocation2] sm:$0xff]  ;;  %s2604_s16 = smov 112   ;;  %s2605_s17 = smov 120   ;;  %vm184_vm1 = vcmask 1047556  }
  0x18   :  { %v98_v5 = vld [vmem:[#allocation2 + $0x8] sm:$0xff]  ;;  %v99_v6 = vld [vmem:[#allocation5] sm:$0xff]  ;;  %v100_v7 = vld [vmem:[#allocation5 + $0x8] sm:$0xff]  ;;  %s2606_s18 = smov 96   ;;  %s2607_s19 = smov 64   ;;  %vm1408_vm2 = vcmask 64512  }
  0x19   :  { %141 = vmatpush.msra.mxu0 %v105_v1  ;;  %v101_v8 = vld [vmem:[#allocation5 + $0x10] sm:$0xff]  ;;  %v102_v9 = vld [vmem:[#allocation5 + $0x18] sm:$0xff]  ;;  %v2398_v11 = vld [vmem:[#allocation10] ss:$0 sm:$0xff]  ;;  %v2608_v51 = vmov 1983009808  }
  0x1a   :  { %v189_v52 = vunpack.c.l.s4 %v2608_v51  ;;  %v2609_v60 = vmov 1934713408   ;;  %vm1641_vm3 = vcmask 130048   ;;  %s2610_s20 = smov 24   ;;  %s2611_s21 = smov 16   ;;  %vm2162_vm4 = vcmask 195584  }
  0x1b   :  { %142 = vmatpush.msra.mxu0 %v104_v2  ;;  %v213_v61 = vunpack.c.l.s4 %v2609_v60  ;;  %s2613_s22 = smov [#allocation11]   ;;  %s2280_s28 = sshll.u32 %s3663_s5, 4  ;;  %s2281_s28 = int_to_ptr.hbm [resolvable:$true] %s2280_s28 }
  0x1c   :  { %v2767_v55 = vunpack.c.0.s8 %v189_v52  ;;  %s2278_s23 = sshll.u32 %s2613_s22, 4  ;;  %s2279_s23 = int_to_ptr.vmem [resolvable:$true] %s2278_s23 }
  0x1d   :  { %143 = vmatpush.msra.mxu0 %v103_v3 }
  0x1e   :  { %2295 = vmatmul.msk.f32.vlgmr.msra.gmra.mxu0 %vm109_vm0, %v97_v4 }
  0x26   :  { %2296 = vmatmul.msk.f32.gmra.mxu0 %vm109_vm0, %v98_v5 }
  0x2e   :  { %2297 = vmatmul.msk.f32.gmra.mxu0 %vm109_vm0, %v99_v6  ;;  %v2775_v6 = vunpack.c.0.s8 %v213_v61 }
  0x36   :  { %2298 = vmatmul.msk.f32.gmra.mxu0 %vm109_vm0, %v100_v7 }
  0x3e   :  { %2299 = vmatmul.msk.f32.gmra.mxu0 %vm109_vm0, %v101_v8 }
  0x46   :  { %2300 = vmatmul.msk.f32.gmra.mxu0 %vm109_vm0, %v102_v9 }
  0x9b   :  { %v145_v10 = vpop.f32.mrf.mxu0 }
  0x9c   :  { %v2706_v23 = vadd.f32 %v2398_v11, %v145_v10 }
  0xa3   :  { %v148_v12 = vpop.f32.mrf.mxu0 }
  0xa4   :  { %v2677_v13 = vadd.f32 %v2398_v11, %v148_v12 }
  0xab   :  { %v151_v14 = vpop.f32.mrf.mxu0 }
  0xac   :  { %v2679_v15 = vadd.f32 %v2398_v11, %v151_v14 }
  0xae   :  { %424 = vrot.lane.b32.xlu1 %v2679_v15, %s2603_s4  ;;  %416 = vrot.lane.b32.xlu2 %v2679_v15, %s2604_s16 }
  0xaf   :  { %408 = vrot.lane.b32.xlu0 %v2679_v15, %s2605_s17 }
  0xb3   :  { %v154_v16 = vpop.f32.mrf.mxu0 }
  0xb4   :  { %v155_v17 = vadd.f32 %v2398_v11, %v154_v16 }
  0xb6   :  { %418 = vrot.lane.b32.xlu1 %v155_v17, %s2604_s16  ;;  %426 = vrot.lane.b32.xlu2 %v155_v17, %s2603_s4  ;;  %v2355_v18 = vpack.i.bf16 %v2679_v15, %v155_v17 }
  0xb7   :  { %432 = vrot.lane.b32.xlu0 %v2679_v15, %s2606_s18 }
  0xbb   :  { %v157_v19 = vpop.f32.mrf.mxu0 }
  0xbc   :  { %v2692_v20 = vadd.f32 %v2398_v11, %v157_v19 }
  0xbe   :  { %412 = vrot.lane.b32.xlu1 %v2692_v20, %s2605_s17  ;;  %428 = vrot.lane.b32.xlu2 %v2692_v20, %s2603_s4 }
  0xbf   :  { %410 = vrot.lane.b32.xlu0 %v155_v17, %s2605_s17 }
  0xc3   :  { %v160_v21 = vpop.f32.mrf.mxu0 }
  0xc4   :  { %v161_v22 = vadd.f32 %v2398_v11, %v160_v21 }
  0xc6   :  { %436 = vrot.lane.b32.xlu1 %v2692_v20, %s2606_s18  ;;  %430 = vrot.lane.b32.xlu2 %v161_v22, %s2603_s4 }
  0xc7   :  { %434 = vrot.lane.b32.xlu0 %v155_v17, %s2606_s18 }
  0xce   :  { %422 = vrot.lane.b32.xlu1 %v161_v22, %s2604_s16 }
  0xcf   :  { %420 = vrot.lane.b32.xlu0 %v2692_v20, %s2604_s16 }
  0xd6   :  { %165 = vrot.lane.b32.xlu1 %v2706_v23, %s2605_s17 }
  0xd7   :  { %414 = vrot.lane.b32.xlu0 %v161_v22, %s2605_s17 }
  0xde   :  { %438 = vrot.lane.b32.xlu1 %v161_v22, %s2606_s18 }
 0x108   :  { %v417_v24 = vpop.permute.xlu2 %416 }
 0x109   :  { %448 = vrot.lane.b32.xlu0 %v417_v24, %s2606_s18 }
 0x110   :  { %v427_v25 = vpop.permute.xlu2 %426 }
 0x118   :  { %v2713_v26 = vpop.permute.xlu2 %428 }
 0x119   :  { %460 = vrot.lane.b32.xlu0 %v2713_v26, %s2606_s18 }
 0x120   :  { %v425_v27 = vpop.permute.xlu1 %424  ;;  %v2730_v37 = vpop.permute.xlu2 %430 }
 0x121   :  { %v2370_v28 = vpack.i.bf16 %v425_v27, %v427_v25  ;;  %v409_v29 = vpop.permute.xlu0 %408  ;;  %456 = vrot.lane.b32.xlu2 %v425_v27, %s2606_s18 }
 0x122   :  { %440 = vrot.lane.b32.xlu1 %v409_v29, %s2606_s18  ;;  %v2365_v42 = vpack.i.bf16 %v417_v24, %v409_v29 }
 0x128   :  { %v419_v30 = vpop.permute.xlu1 %418 }
 0x129   :  { %v433_v31 = vpop.permute.xlu0 %432 }
 0x12a   :  { %450 = vrot.lane.b32.xlu1 %v419_v30, %s2606_s18  ;;  %v482_v53 = vrot.slane %v433_v31, 4 }
 0x130   :  { %v2720_v32 = vpop.permute.xlu1 %412 }
 0x131   :  { %v411_v34 = vpop.permute.xlu0 %410 }
 0x132   :  { %442 = vrot.lane.b32.xlu2 %v411_v34, %s2606_s18  ;;  %v2360_v43 = vpack.i.bf16 %v419_v30, %v411_v34 }
 0x138   :  { %v2728_v36 = vpop.permute.xlu1 %436 }
 0x139   :  { %v2725_v35 = vpop.permute.xlu0 %434 }
 0x13a   :  { %458 = vrot.lane.b32.xlu2 %v427_v25, %s2606_s18  ;;  %v538_v30 = vrot.slane %v2725_v35, 4 }
 0x140   :  { %v423_v40 = vpop.permute.xlu1 %422 }
 0x141   :  { %v2732_v38 = vpop.permute.xlu0 %420  ;;  %v2375_v44 = vpack.i.bf16 %v161_v22, %v423_v40 }
 0x142   :  { %444 = vrot.lane.b32.xlu2 %v2720_v32, %s2606_s18  ;;  %452 = vrot.lane.b32.xlu1 %v2732_v38, %s2606_s18 }
 0x148   :  { %v2762_v45 = vpop.permute.xlu1 %165 }
 0x149   :  { %v2740_v41 = vpop.permute.xlu0 %414 }
 0x14a   :  { %454 = vrot.lane.b32.xlu2 %v423_v40, %s2606_s18  ;;  %446 = vrot.lane.b32.xlu0 %v2740_v41, %s2606_s18 }
 0x14b   :  { %173 = vrot.lane.b32.xlu1 %v2677_v13, %s2604_s16 }
 0x150   :  { %v2764_v48 = vpop.permute.xlu1 %438 }
 0x152   :  { %167 = vrot.lane.b32.xlu2 %v2677_v13, %s2605_s17  ;;  %171 = vrot.lane.b32.xlu0 %v2706_v23, %s2604_s16 }
 0x153   :  { %2366 = vrot.lane.b32.xlu1 %v2365_v42, %s2607_s19 }
 0x15a   :  { %177 = vrot.lane.b32.xlu2 %v2706_v23, %s2603_s4  ;;  %462 = vrot.lane.b32.xlu0 %v2730_v37, %s2606_s18 }
 0x162   :  { %2356 = vrot.lane.b32.xlu2 %v2355_v18, %s2607_s19  ;;  %179 = vrot.lane.b32.xlu0 %v2677_v13, %s2603_s4 }
 0x16a   :  { %2376 = vrot.lane.b32.xlu2 %v2375_v44, %s2607_s19  ;;  %2361 = vrot.lane.b32.xlu0 %v2360_v43, %s2607_s19  ;;  %v594_v44 = vrot.slane %v2728_v36, 4 }
 0x172   :  { %2371 = vrot.lane.b32.xlu0 %v2370_v28, %s2607_s19 }
 0x17b   :  { %v457_v46 = vpop.permute.xlu2 %456  ;;  %v449_v47 = vpop.permute.xlu0 %448 }
 0x17c   :  { %v480_v49 = vrot.slane %v449_v47, 4  ;;  %v483_v56 = vsel %vm184_vm1, %v449_v47, %v482_v53  ;;  %v492_v57 = vrot.slane %v457_v46, 4 }
 0x17d   :  { %v491_v63 = vperm.slane %v483_v56, %v2767_v55 }
 0x17e   :  { %v481_v54 = vsel %vm184_vm1, %v480_v49, %v433_v31 }
 0x17f   :  { %v487_v58 = vperm.slane %v481_v54, %v2767_v55  ;;  %v518_v9 = vrot.slane %v491_v63, 4 }
 0x181   :  { %v506_v3 = vrot.slane %v487_v58, 4 }
 0x18c   :  { %v443_v50 = vpop.permute.xlu2 %442 }
 0x18d   :  { %v550_v10 = vrot.slane %v443_v50, 4 }
 0x194   :  { %v459_v59 = vpop.permute.xlu2 %458  ;;  %v441_v62 = vpop.permute.xlu1 %440 }
 0x195   :  { %v493_v0 = vsel %vm184_vm1, %v492_v57, %v441_v62  ;;  %v494_v1 = vrot.slane %v441_v62, 4  ;;  %v548_v4 = vrot.slane %v459_v59, 4  ;;  %v551_v15 = vsel %vm184_vm1, %v459_v59, %v550_v10 }
 0x196   :  { %v499_v2 = vperm.slane %v493_v0, %v2767_v55  ;;  %v559_v28 = vperm.slane %v551_v15, %v2767_v55 }
 0x197   :  { %v495_v5 = vsel %vm184_vm1, %v457_v46, %v494_v1  ;;  %v549_v14 = vsel %vm184_vm1, %v548_v4, %v443_v50  ;;  %v461_v50 = vpop.permute.xlu0 %460 }
 0x198   :  { %v503_v7 = vperm.slane %v495_v5, %v2767_v55  ;;  %v504_v8 = vrot.slane %v499_v2, 4  ;;  %v507_v11 = vsel %vm184_vm1, %v499_v2, %v506_v3  ;;  %v555_v27 = vperm.slane %v549_v14, %v2767_v55 }
 0x199   :  { %v515_v18 = vperm.slane %v507_v11, %v2775_v6  ;;  %v572_v49 = vrot.slane %v559_v28, 4  ;;  %v198_v2 = vrot.slane %v2762_v45, 4  ;;  %v650_v11 = vrot.slane %v2764_v48, 4 }
 0x19a   :  { %v516_v12 = vrot.slane %v503_v7, 4  ;;  %v519_v16 = vsel %vm184_vm1, %v503_v7, %v518_v9  ;;  %v505_v17 = vsel %vm184_vm1, %v504_v8, %v487_v58  ;;  %v560_v47 = vrot.slane %v555_v27, 4 }
 0x19b   :  { %v527_v21 = vperm.slane %v519_v16, %v2775_v6  ;;  %v511_v31 = vperm.slane %v505_v17, %v2775_v6  ;;  %v530_v34 = vrot.slane %v515_v18, 4 }
 0x19c   :  { %v517_v19 = vsel %vm184_vm1, %v516_v12, %v491_v63  ;;  %v2786_v22 = vpop.permute.xlu2 %444  ;;  %v451_v25 = vpop.permute.xlu1 %450  ;;  %v604_v63 = vrot.slane %v461_v50, 4 }
 0x19d   :  { %v523_v24 = vperm.slane %v517_v19, %v2775_v6  ;;  %v534_v29 = vrot.slane %v527_v21, 4  ;;  %v536_v43 = vrot.slane %v451_v25, 4  ;;  %v539_v46 = vsel %vm184_vm1, %v451_v25, %v538_v30 }
 0x19e   :  { %v547_v52 = vperm.slane %v539_v46, %v2767_v55  ;;  %v528_v53 = vrot.slane %v511_v31, 4  ;;  %v531_v58 = vsel %vm184_vm1, 0.0, %v530_v34  ;;  %v704_v14 = vsel %vm184_vm1, %v530_v34, %v511_v31 }
 0x19f   :  { %v532_v40 = vrot.slane %v523_v24, 4  ;;  %v535_v42 = vsel %vm184_vm1, 0.0, %v534_v29  ;;  %v537_v51 = vsel %vm184_vm1, %v536_v43, %v2725_v35  ;;  %v715_v57 = vsel %vm184_vm1, %v534_v29, %v523_v24 }
 0x1a0   :  { %v720_v54 = vrot.slane %v535_v42, 4  ;;  %v543_v56 = vperm.slane %v537_v51, %v2767_v55  ;;  %v573_v59 = vsel %vm184_vm1, %v572_v49, %v547_v52  ;;  %v574_v60 = vrot.slane %v547_v52, 4 }
 0x1a1   :  { %v533_v62 = vsel %vm184_vm1, 0.0, %v532_v40  ;;  %v579_v1 = vperm.slane %v573_v59, %v2775_v6  ;;  %v719_v5 = vperm.slane %v715_v57, %v2767_v55  ;;  %v709_v7 = vrot.slane %v531_v58, 4 }
 0x1a2   :  { %v561_v35 = vsel %vm184_vm1, %v560_v47, %v543_v56  ;;  %v562_v0 = vrot.slane %v543_v56, 4  ;;  %v575_v4 = vsel %vm184_vm1, %v559_v28, %v574_v60  ;;  %v721_v10 = vsel %vm184_vm1, %v720_v54, %v533_v62 }
 0x1a3   :  { %v567_v3 = vperm.slane %v561_v35, %v2775_v6  ;;  %v583_v9 = vperm.slane %v575_v4, %v2775_v6  ;;  %v529_v12 = vsel %vm184_vm1, 0.0, %v528_v53  ;;  %v605_v16 = vsel %vm184_vm1, %v604_v63, %v2786_v22 }
 0x1a4   :  { %v2803_v61 = vpop.permute.xlu2 %454  ;;  %v563_v8 = vsel %vm184_vm1, %v555_v27, %v562_v0  ;;  %v588_v18 = vrot.slane %v579_v1, 4  ;;  %v606_v21 = vrot.slane %v2786_v22, 4  ;;  %v725_v25 = vperm.slane %v721_v10, %v2767_v55 }
 0x1a5   :  { %v571_v15 = vperm.slane %v563_v8, %v2775_v6  ;;  %v584_v17 = vrot.slane %v567_v3, 4  ;;  %v590_v19 = vrot.slane %v583_v9, 4  ;;  %v740_v27 = vrot.slane %v719_v5, 4 }
 0x1a6   :  { %v708_v30 = vperm.slane %v704_v14, %v2767_v55  ;;  %v710_v31 = vsel %vm184_vm1, %v709_v7, %v529_v12  ;;  %v589_v46 = vsel %vm184_vm1, 0.0, %v588_v18  ;;  %v738_v56 = vrot.slane %v725_v25, 4 }
 0x1a7   :  { %v586_v24 = vrot.slane %v571_v15, 4  ;;  %v591_v28 = vsel %vm184_vm1, 0.0, %v590_v19  ;;  %v769_v29 = vsel %vm184_vm1, %v590_v19, %v579_v1  ;;  %v585_v47 = vsel %vm184_vm1, 0.0, %v584_v17 }
 0x1a8   :  { %v773_v34 = vperm.slane %v769_v29, %v2767_v55  ;;  %v774_v40 = vrot.slane %v591_v28, 4  ;;  %v741_v54 = vsel %vm184_vm1, %v725_v25, %v740_v27  ;;  %v611_v57 = vperm.slane %v605_v16, %v2767_v55 }
 0x1a9   :  { %v587_v43 = vsel %vm184_vm1, 0.0, %v586_v24  ;;  %v758_v22 = vsel %vm184_vm1, %v586_v24, %v567_v3  ;;  %v607_v62 = vsel %vm184_vm1, %v461_v50, %v606_v21  ;;  %v714_v35 = vperm.slane %v710_v31, %v2767_v55 }
 0x1aa   :  { %v762_v49 = vperm.slane %v758_v22, %v2767_v55  ;;  %v763_v51 = vrot.slane %v587_v43, 4  ;;  %v775_v52 = vsel %vm184_vm1, %v774_v40, %v589_v46  ;;  %v794_v53 = vrot.slane %v773_v34, 4 }
 0x1ab   :  { %v779_v59 = vperm.slane %v775_v52, %v2767_v55  ;;  %v728_v3 = vrot.slane %v708_v30, 4  ;;  %v2845_v4 = vperm.slane %v741_v54, %v2775_v6  ;;  %v739_v50 = vsel %vm184_vm1, %v738_v56, %v719_v5 }
 0x1ac   :  { %v2828_v42 = vpop.permute.xlu2 %167  ;;  %v764_v58 = vsel %vm184_vm1, %v763_v51, %v585_v47  ;;  %v782_v60 = vrot.slane %v762_v49, 4  ;;  %v615_v10 = vperm.slane %v607_v62, %v2767_v55  ;;  %v616_v12 = vrot.slane %v611_v57, 4 }
 0x1ad   :  { %v768_v63 = vperm.slane %v764_v58, %v2767_v55  ;;  %v795_v0 = vsel %vm184_vm1, %v779_v59, %v794_v53  ;;  %v792_v1 = vrot.slane %v779_v59, 4  ;;  %v726_v21 = vrot.slane %v714_v35, 4 }
 0x1ae   :  { %v2849_v8 = vperm.slane %v795_v0, %v2775_v6  ;;  %v648_v24 = vrot.slane %v2803_v61, 4  ;;  %v729_v27 = vsel %vm184_vm1, %v714_v35, %v728_v3  ;;  %v2865_v28 = vperm.slane %v739_v50, %v2775_v6 }
 0x1af   :  { %v783_v7 = vsel %vm184_vm1, %v768_v63, %v782_v60  ;;  %v780_v9 = vrot.slane %v768_v63, 4  ;;  %v793_v15 = vsel %vm184_vm1, %v792_v1, %v773_v34  ;;  %v754_v40 = vrot.slane %v2845_v4, 4 }
 0x1b0   :  { %v2854_v14 = vperm.slane %v783_v7, %v2775_v6  ;;  %v808_v16 = vrot.slane %v2849_v8, 4  ;;  %v2860_v19 = vperm.slane %v793_v15, %v2775_v6  ;;  %v628_v43 = vrot.slane %v615_v10, 4 }
 0x1b1   :  { %v781_v18 = vsel %vm184_vm1, %v780_v9, %v762_v49  ;;  %v727_v52 = vsel %vm184_vm1, %v726_v21, %v708_v30  ;;  %v649_v58 = vsel %vm184_vm1, %v648_v24, %v2764_v48  ;;  %v651_v30 = vsel %vm184_vm1, %v2803_v61, %v650_v11 }
 0x1b2   :  { %v809_v29 = vsel %vm184_vm1, %v808_v16, %v2854_v14  ;;  %v2873_v34 = vperm.slane %v781_v18, %v2775_v6  ;;  %v804_v47 = vrot.slane %v2860_v19, 4  ;;  %v2906_v0 = vperm.slane %v727_v52, %v2775_v6 }
 0x1b3   :  { %2313 = vmatpush.xpose.msk.msra.mxu2 %vm1408_vm2, %v809_v29  ;;  %v254_v29 = vrot.slane %v2828_v42, 4 }
 0x1b4   :  { %v453_v17 = vpop.permute.xlu1 %452  ;;  %v178_v5 = vpop.permute.xlu2 %177  ;;  %v805_v56 = vsel %vm184_vm1, %v804_v47, %v2873_v34 }
 0x1b5   :  { %v592_v25 = vrot.slane %v453_v17, 4  ;;  %v595_v31 = vsel %vm184_vm1, %v453_v17, %v594_v44  ;;  %v196_v49 = vrot.slane %v178_v5, 4  ;;  %v2883_v44 = vperm.slane %v729_v27, %v2775_v6  ;;  %2301 = vmatpush.xpose.msk.msra.mxu1 %vm1408_vm2, %v805_v56 }
 0x1b6   :  { %v603_v46 = vperm.slane %v595_v31, %v2767_v55  ;;  %v199_v63 = vsel %vm184_vm1, %v178_v5, %v198_v2  ;;  %v2916_v2 = vperm.slane %v649_v58, %v2767_v55  ;;  %v242_v5 = vrot.slane %v2677_v13, 4 }
 0x1b7   :  { %v593_v22 = vsel %vm184_vm1, %v592_v25, %v2728_v36  ;;  %v750_v36 = vrot.slane %v2865_v28, 4  ;;  %v755_v62 = vsel %vm184_vm1, %v754_v40, %v2883_v44  ;;  %v197_v1 = vsel %vm184_vm1, %v196_v49, %v2762_v45 }
 0x1b8   :  { %v599_v51 = vperm.slane %v593_v22, %v2767_v55  ;;  %v629_v53 = vsel %vm184_vm1, %v628_v43, %v603_v46  ;;  %v630_v54 = vrot.slane %v603_v46, 4  ;;  %2314 = vmatpush.xpose.msk.msra.mxu2 %vm1408_vm2, %v755_v62  ;;  %v674_v21 = vrot.slane %v2916_v2, 4 }
 0x1b9   :  { %v635_v48 = vperm.slane %v629_v53, %v2775_v6  ;;  %v751_v9 = vsel %vm184_vm1, %v750_v36, %v2906_v0  ;;  %v186_v25 = vrot.slane %v2706_v23, 4 }
 0x1ba   :  { %v617_v59 = vsel %vm184_vm1, %v616_v12, %v599_v51  ;;  %v618_v60 = vrot.slane %v599_v51, 4  ;;  %v631_v35 = vsel %vm184_vm1, %v615_v10, %v630_v54  ;;  %v2922_v10 = vperm.slane %v651_v30, %v2767_v55  ;;  %2302 = vmatpush.xpose.msk.msra.mxu1 %vm1408_vm2, %v751_v9 }
 0x1bb   :  { %v639_v61 = vperm.slane %v631_v35, %v2775_v6  ;;  %v623_v7 = vperm.slane %v617_v59, %v2775_v6  ;;  %v207_v12 = vperm.slane %v199_v63, %v2767_v55  ;;  %v644_v16 = vrot.slane %v635_v48, 4 }
 0x1bc   :  { %v619_v3 = vsel %vm184_vm1, %v611_v57, %v618_v60  ;;  %v2913_v11 = vpop.permute.xlu0 %446  ;;  %v203_v57 = vperm.slane %v197_v1, %v2767_v55  ;;  %v2928_v15 = vpop.permute.xlu2 %2356  ;;  %v686_v27 = vrot.slane %v2922_v10, 4 }
 0x1bd   :  { %v174_v50 = vpop.permute.xlu1 %173  ;;  %v627_v45 = vperm.slane %v619_v3, %v2775_v6  ;;  %v646_v17 = vrot.slane %v639_v61, 4  ;;  %v640_v24 = vrot.slane %v623_v7, 4  ;;  %v2359_v40 = vunpack.i.h.bf16 %v2928_v15 }
 0x1be   :  { %v240_v18 = vrot.slane %v174_v50, 4  ;;  %v208_v22 = vrot.slane %v203_v57, 4  ;;  %v220_v46 = vrot.slane %v207_v12, 4  ;;  %v662_v47 = vrot.slane %v2913_v11, 4 }
 0x1bf   :  { %v642_v31 = vrot.slane %v627_v45, 4  ;;  %v645_v49 = vsel %vm184_vm1, 0.0, %v644_v16  ;;  %v647_v51 = vsel %vm184_vm1, 0.0, %v646_v17  ;;  %v2358_v52 = vunpack.i.l.bf16 %v2928_v15 }
 0x1c0   :  { %v241_v53 = vsel %vm184_vm1, %v240_v18, %v2677_v13  ;;  %v641_v56 = vsel %vm184_vm1, 0.0, %v640_v24  ;;  %v243_v36 = vsel %vm184_vm1, %v174_v50, %v242_v5  ;;  %v970_v30 = vrot.slane %v2359_v40, 4 }
 0x1c1   :  { %v643_v62 = vsel %vm184_vm1, 0.0, %v642_v31  ;;  %v823_v1 = vsel %vm184_vm1, %v646_v17, %v635_v48  ;;  %v828_v13 = vrot.slane %v647_v51, 4  ;;  %v2953_v3 = vperm.slane %v241_v53, %v2767_v55 }
 0x1c2   :  { %v2958_v9 = vperm.slane %v243_v36, %v2767_v55  ;;  %v817_v18 = vrot.slane %v643_v62, 4  ;;  %v2964_v24 = vrot.slane %v2358_v52, 4  ;;  %v812_v17 = vsel %vm184_vm1, %v642_v31, %v623_v7 }
 0x1c3   :  { %v2970_v51 = vperm.slane %v823_v1, %v2767_v55  ;;  %v829_v53 = vsel %vm184_vm1, %v828_v13, %v645_v49 }
 0x1c4   :  { %v172_v54 = vpop.permute.xlu0 %171  ;;  %v818_v1 = vsel %vm184_vm1, %v817_v18, %v641_v56 }
 0x1c5   :  { %v183_v58 = vrot.slane %v172_v54, 4  ;;  %v187_v59 = vsel %vm184_vm1, %v172_v54, %v186_v25  ;;  %v2946_v60 = vpop.permute.xlu1 %2366  ;;  %v2996_v18 = vperm.slane %v818_v1, %v2767_v55 }
 0x1c6   :  { %v195_v63 = vperm.slane %v187_v59, %v2767_v55  ;;  %v2369_v35 = vunpack.i.h.bf16 %v2946_v60  ;;  %v2368_v49 = vunpack.i.l.bf16 %v2946_v60 }
 0x1c7   :  { %v185_v61 = vsel %vm184_vm1, %v183_v58, %v2706_v23  ;;  %v278_v58 = vrot.slane %v2958_v9, 4 }
 0x1c8   :  { %v191_v50 = vperm.slane %v185_v61, %v2767_v55  ;;  %v221_v45 = vsel %vm184_vm1, %v220_v46, %v195_v63  ;;  %v222_v16 = vrot.slane %v195_v63, 4  ;;  %v968_v25 = vrot.slane %v2369_v35, 4 }
 0x1c9   :  { %v227_v48 = vperm.slane %v221_v45, %v2775_v6  ;;  %v266_v46 = vrot.slane %v2953_v3, 4  ;;  %v971_v63 = vsel %vm184_vm1, %v2369_v35, %v970_v30  ;;  %v2985_v45 = vperm.slane %v829_v53, %v2767_v55 }
 0x1ca   :  { %v209_v5 = vsel %vm184_vm1, %v208_v22, %v191_v50  ;;  %v210_v23 = vrot.slane %v191_v50, 4  ;;  %v223_v36 = vsel %vm184_vm1, %v207_v12, %v222_v16  ;;  %v969_v12 = vsel %vm184_vm1, %v968_v25, %v2359_v40 }
 0x1cb   :  { %v215_v54 = vperm.slane %v209_v5, %v2775_v6  ;;  %v231_v7 = vperm.slane %v223_v36, %v2775_v6  ;;  %v236_v31 = vrot.slane %v227_v48, 4  ;;  %v2989_v5 = vperm.slane %v812_v17, %v2767_v55 }
 0x1cc   :  { %v211_v59 = vsel %vm184_vm1, %v203_v57, %v210_v23  ;;  %v463_v22 = vpop.permute.xlu0 %462  ;;  %v3000_v23 = vperm.slane %v969_v12, %v2767_v55  ;;  %v3008_v25 = vrot.slane %v2368_v49, 4 }
 0x1cd   :  { %v219_v62 = vperm.slane %v211_v59, %v2775_v6  ;;  %v232_v13 = vrot.slane %v215_v54, 4  ;;  %v238_v61 = vrot.slane %v231_v7, 4  ;;  %v660_v50 = vrot.slane %v463_v22, 4 }
 0x1ce   :  { %v663_v16 = vsel %vm184_vm1, %v463_v22, %v662_v47  ;;  %v237_v30 = vsel %vm184_vm1, 0.0, %v236_v31  ;;  %v3003_v47 = vperm.slane %v971_v63, %v2767_v55 }
 0x1cf   :  { %v234_v57 = vrot.slane %v219_v62, 4  ;;  %v239_v35 = vsel %vm184_vm1, 0.0, %v238_v61  ;;  %v661_v56 = vsel %vm184_vm1, %v660_v50, %v2913_v11  ;;  %v671_v53 = vperm.slane %v663_v16, %v2767_v55 }
 0x1d0   :  { %v667_v17 = vperm.slane %v661_v56, %v2767_v55  ;;  %v233_v11 = vsel %vm184_vm1, 0.0, %v232_v13  ;;  %v307_v59 = vsel %vm184_vm1, %v238_v61, %v227_v48  ;;  %v312_v7 = vrot.slane %v239_v35, 4 }
 0x1d1   :  { %v235_v40 = vsel %vm184_vm1, 0.0, %v234_v57  ;;  %v684_v63 = vrot.slane %v671_v53, 4  ;;  %v687_v1 = vsel %vm184_vm1, %v671_v53, %v686_v27  ;;  %v296_v50 = vsel %vm184_vm1, %v234_v57, %v215_v54 }
 0x1d2   :  { %v301_v36 = vrot.slane %v235_v40, 4  ;;  %v672_v31 = vrot.slane %v667_v17, 4  ;;  %v675_v22 = vsel %vm184_vm1, %v667_v17, %v674_v21  ;;  %v695_v13 = vperm.slane %v687_v1, %v2775_v6 }
 0x1d3   :  { %v683_v62 = vperm.slane %v675_v22, %v2775_v6  ;;  %v685_v35 = vsel %vm184_vm1, %v684_v63, %v2922_v10  ;;  %v994_v54 = vrot.slane %v3000_v23, 4  ;;  %v1006_v57 = vrot.slane %v3003_v47, 4 }
 0x1d4   :  { %v180_v12 = vpop.permute.xlu0 %179  ;;  %v302_v61 = vsel %vm184_vm1, %v301_v36, %v233_v11  ;;  %v673_v21 = vsel %vm184_vm1, %v672_v31, %v2916_v2  ;;  %v702_v40 = vrot.slane %v695_v13, 4  ;;  %v311_v17 = vperm.slane %v307_v59, %v2767_v55 }
 0x1d5   :  { %v252_v16 = vrot.slane %v180_v12, 4  ;;  %v255_v48 = vsel %vm184_vm1, %v180_v12, %v254_v29  ;;  %v3030_v56 = vrot.slane %v683_v62, 4  ;;  %v300_v11 = vperm.slane %v296_v50, %v2767_v55 }
 0x1d6   :  { %v263_v27 = vperm.slane %v255_v48, %v2767_v55  ;;  %v313_v10 = vsel %vm184_vm1, %v312_v7, %v237_v30  ;;  %v679_v36 = vperm.slane %v673_v21, %v2775_v6  ;;  %v691_v31 = vperm.slane %v685_v35, %v2775_v6 }
 0x1d7   :  { %v253_v29 = vsel %vm184_vm1, %v252_v16, %v2828_v42  ;;  %v306_v22 = vperm.slane %v302_v61, %v2767_v55  ;;  %v699_v62 = vsel %vm184_vm1, 0.0, %v3030_v56  ;;  %v703_v1 = vsel %vm184_vm1, 0.0, %v702_v40 }
 0x1d8   :  { %v259_v53 = vperm.slane %v253_v29, %v2767_v55  ;;  %v276_v2 = vrot.slane %v263_v27, 4  ;;  %v279_v7 = vsel %vm184_vm1, %v263_v27, %v278_v58  ;;  %v320_v16 = vrot.slane %v300_v11, 4 }
 0x1d9   :  { %v287_v13 = vperm.slane %v279_v7, %v2775_v6  ;;  %v700_v61 = vrot.slane %v691_v31, 4  ;;  %v332_v35 = vrot.slane %v311_v17, 4 }
 0x1da   :  { %v264_v63 = vrot.slane %v259_v53, 4  ;;  %v267_v42 = vsel %vm184_vm1, %v259_v53, %v266_v46  ;;  %v277_v59 = vsel %vm184_vm1, %v276_v2, %v2958_v9  ;;  %v317_v46 = vperm.slane %v313_v10, %v2767_v55 }
 0x1db   :  { %v275_v30 = vperm.slane %v267_v42, %v2775_v6  ;;  %v283_v12 = vperm.slane %v277_v59, %v2775_v6  ;;  %v294_v29 = vrot.slane %v287_v13, 4  ;;  %v696_v53 = vrot.slane %v679_v36, 4 }
 0x1dc   :  { %v265_v50 = vsel %vm184_vm1, %v264_v63, %v2953_v3  ;;  %v3061_v48 = vpop.permute.xlu0 %2361  ;;  %v321_v3 = vsel %vm184_vm1, %v306_v22, %v320_v16  ;;  %v871_v2 = vrot.slane %v699_v62, 4  ;;  %v877_v10 = vsel %vm184_vm1, %v702_v40, %v691_v31 }
 0x1dd   :  { %v3063_v21 = vrot.slane %v275_v30, 4  ;;  %v3067_v58 = vperm.slane %v265_v50, %v2775_v6  ;;  %v292_v27 = vrot.slane %v283_v12, 4  ;;  %v882_v63 = vrot.slane %v703_v1, 4 }
 0x1de   :  { %v3076_v59 = vsel %vm184_vm1, 0.0, %v294_v29  ;;  %v333_v30 = vsel %vm184_vm1, %v317_v46, %v332_v35  ;;  %v2364_v7 = vunpack.i.h.bf16 %v3061_v48  ;;  %v701_v50 = vsel %vm184_vm1, 0.0, %v700_v61 }
 0x1df   :  { %v3073_v42 = vsel %vm184_vm1, 0.0, %v3063_v21  ;;  %v3082_v13 = vperm.slane %v321_v3, %v2775_v6  ;;  %v3085_v62 = vperm.slane %v333_v30, %v2775_v6  ;;  %v2363_v40 = vunpack.i.l.bf16 %v3061_v48 }
 0x1e0   :  { %v3090_v1 = vsel %vm184_vm1, 0.0, %v292_v27  ;;  %v318_v16 = vrot.slane %v306_v22, 4  ;;  %v330_v39 = vrot.slane %v317_v46, 4  ;;  %v355_v35 = vrot.slane %v3073_v42, 4 }
 0x1e1   :  { %v3094_v33 = vsel %vm184_vm1, %v294_v29, %v283_v12  ;;  %v366_v61 = vrot.slane %v3076_v59, 4  ;;  %v346_v3 = vrot.slane %v3085_v62, 4  ;;  %v1024_v30 = vrot.slane %v2364_v7, 4 }
 0x1e2   :  { %v319_v43 = vsel %vm184_vm1, %v318_v16, %v300_v11  ;;  %v331_v9 = vsel %vm184_vm1, %v330_v39, %v311_v17  ;;  %v697_v31 = vsel %vm184_vm1, 0.0, %v696_v53  ;;  %v1027_v46 = vsel %vm184_vm1, %v2364_v7, %v2964_v24 }
 0x1e3   :  { %v347_v22 = vsel %vm184_vm1, %v346_v3, %v3082_v13  ;;  %v3106_v12 = vperm.slane %v319_v43, %v2775_v6  ;;  %v3109_v27 = vperm.slane %v331_v9, %v2775_v6  ;;  %v1038_v39 = vrot.slane %v2363_v40, 4 }
 0x1e4   :  { %v2372_v29 = vpop.permute.xlu0 %2371  ;;  %2315 = vmatmul.msk.f32.vlgmr.msra.gmra.mxu2 %vm1408_vm2, %v347_v22  ;;  %v866_v17 = vsel %vm184_vm1, %v3030_v56, %v679_v36  ;;  %v872_v11 = vsel %vm184_vm1, %v871_v2, %v697_v31  ;;  %v881_v53 = vperm.slane %v877_v10, %v2767_v55  ;;  %v883_v7 = vsel %vm184_vm1, %v882_v63, %v701_v50 }
 0x1e5   :  { %v342_v24 = vrot.slane %v3109_v27, 4  ;;  %v870_v43 = vperm.slane %v866_v17, %v2767_v55  ;;  %v876_v9 = vperm.slane %v872_v11, %v2767_v55  ;;  %v1025_v16 = vsel %vm184_vm1, %v1024_v30, %v2358_v52 }
 0x1e6   :  { %v887_v3 = vperm.slane %v883_v7, %v2767_v55  ;;  %v902_v22 = vrot.slane %v881_v53, 4  ;;  %v2374_v56 = vunpack.i.h.bf16 %v2372_v29  ;;  %v1035_v36 = vperm.slane %v1027_v46, %v2767_v55 }
 0x1e7   :  { %v343_v2 = vsel %vm184_vm1, %v342_v24, %v3106_v12  ;;  %v888_v10 = vrot.slane %v876_v9, 4  ;;  %v890_v31 = vrot.slane %v870_v43, 4  ;;  %v2373_v63 = vunpack.i.l.bf16 %v2372_v29 }
 0x1e8   :  { %2303 = vmatmul.msk.f32.vlgmr.msra.gmra.mxu1 %vm1408_vm2, %v343_v2  ;;  %v900_v17 = vrot.slane %v887_v3, 4  ;;  %v980_v11 = vrot.slane %v2374_v56, 4  ;;  %v983_v15 = vsel %vm184_vm1, %v2374_v56, %v3008_v25  ;;  %v903_v30 = vsel %vm184_vm1, %v887_v3, %v902_v22 }
 0x1e9   :  { %v889_v52 = vsel %vm184_vm1, %v888_v10, %v870_v43  ;;  %v891_v50 = vsel %vm184_vm1, %v876_v9, %v890_v31  ;;  %v991_v46 = vperm.slane %v983_v15, %v2767_v55  ;;  %v1031_v24 = vperm.slane %v1025_v16, %v2767_v55 }
 0x1ea   :  { %v901_v7 = vsel %vm184_vm1, %v900_v17, %v881_v53  ;;  %v3139_v2 = vperm.slane %v891_v50, %v2775_v6  ;;  %v981_v29 = vsel %vm184_vm1, %v980_v11, %v2368_v49  ;;  %v895_v25 = vperm.slane %v889_v52, %v2775_v6 }
 0x1eb   :  { %v907_v43 = vperm.slane %v901_v7, %v2775_v6  ;;  %v987_v9 = vperm.slane %v981_v29, %v2767_v55  ;;  %v1004_v3 = vrot.slane %v991_v46, 4  ;;  %v3148_v22 = vperm.slane %v903_v30, %v2775_v6 }
 0x1ec   :  { %v918_v16 = vrot.slane %v3139_v2, 4  ;;  %v1036_v53 = vrot.slane %v2373_v63, 4  ;;  %v1039_v56 = vsel %vm184_vm1, %v2373_v63, %v1038_v39  ;;  %v1007_v49 = vsel %vm184_vm1, %v991_v46, %v1006_v57 }
 0x1ed   :  { %v912_v10 = vrot.slane %v907_v43, 4  ;;  %v992_v31 = vrot.slane %v987_v9, 4  ;;  %v995_v60 = vsel %vm184_vm1, %v987_v9, %v994_v54  ;;  %v1062_v17 = vrot.slane %v1035_v36, 4 }
 0x1ee   :  { %v919_v11 = vsel %vm184_vm1, %v3148_v22, %v918_v16  ;;  %v1003_v15 = vperm.slane %v995_v60, %v2775_v6  ;;  %v1005_v52 = vsel %vm184_vm1, %v1004_v3, %v3003_v47  ;;  %v1037_v57 = vsel %vm184_vm1, %v1036_v53, %v2363_v40 }
 0x1ef   :  { %v913_v39 = vsel %vm184_vm1, %v912_v10, %v895_v25  ;;  %2322 = vmatpush.xpose.msk.msrb.mxu2 %vm1408_vm2, %v919_v11  ;;  %v993_v54 = vsel %vm184_vm1, %v992_v31, %v3000_v23  ;;  %v1047_v63 = vperm.slane %v1039_v56, %v2767_v55  ;;  %v348_v50 = vrot.slane %v3082_v13, 4 }
 0x1f0   :  { %v1050_v30 = vrot.slane %v1031_v24, 4  ;;  %2304 = vmatpush.xpose.msk.msra.mxu3 %vm1408_vm2, %v913_v39  ;;  %v1015_v47 = vperm.slane %v1007_v49, %v2775_v6  ;;  %v3174_v46 = vrot.slane %v1003_v15, 4  ;;  %v1043_v7 = vperm.slane %v1037_v57, %v2767_v55 }
 0x1f1   :  { %v1060_v29 = vrot.slane %v1047_v63, 4  ;;  %v1063_v23 = vsel %vm184_vm1, %v1047_v63, %v1062_v17  ;;  %v914_v9 = vrot.slane %v895_v25, 4  ;;  %v367_v48 = vsel %vm184_vm1, %v366_v61, %v3090_v1 }
 0x1f2   :  { %v3183_v40 = vperm.slane %v993_v54, %v2775_v6  ;;  %v3186_v3 = vperm.slane %v1005_v52, %v2775_v6  ;;  %v3664_v16 = vrot.slane %v2996_v18, 4  ;;  %v1048_v56 = vrot.slane %v1043_v7, 4 }
 0x1f3   :  { %v1051_v10 = vsel %vm184_vm1, %v1043_v7, %v1050_v30  ;;  %v1061_v25 = vsel %vm184_vm1, %v1060_v29, %v1035_v36  ;;  %v1071_v59 = vperm.slane %v1063_v23, %v2775_v6  ;;  %v916_v1 = vrot.slane %v3148_v22, 4 }
 0x1f4   :  { %v835_v53 = vsel %vm184_vm1, %v3664_v16, %v2989_v5  ;;  %v3196_v61 = vrot.slane %v1015_v47, 4  ;;  %v1059_v31 = vperm.slane %v1051_v10, %v2775_v6  ;;  %v3200_v60 = vperm.slane %v1061_v25, %v2775_v6 }
 0x1f5   :  { %v3204_v49 = vsel %vm184_vm1, 0.0, %v3174_v46  ;;  %v1049_v17 = vsel %vm184_vm1, %v1048_v56, %v1031_v24  ;;  %v3207_v11 = vrot.slane %v1071_v59, 4  ;;  %v915_v36 = vsel %vm184_vm1, %v907_v43, %v914_v9 }
 0x1f6   :  { %v1016_v15 = vrot.slane %v3183_v40, 4  ;;  %v1020_v52 = vrot.slane %v3186_v3, 4  ;;  %v3212_v39 = vrot.slane %v1059_v31, 4  ;;  %2310 = vmatpush.xpose.msk.msrb.mxu1 %vm1408_vm2, %v915_v36  ;;  %v846_v54 = vrot.slane %v2985_v45, 4 }
 0x1f7   :  { %v841_v57 = vperm.slane %v835_v53, %v2775_v6  ;;  %v836_v63 = vrot.slane %v2989_v5, 4  ;;  %v848_v24 = vrot.slane %v2970_v51, 4  ;;  %v806_v30 = vrot.slane %v2873_v34, 4 }
 0x1f8   :  { %v3222_v43 = vsel %vm184_vm1, 0.0, %v3196_v61  ;;  %v3225_v47 = vperm.slane %v1049_v17, %v2775_v6  ;;  %v1076_v7 = vrot.slane %v3200_v60, 4  ;;  %v1197_v29 = vrot.slane %v3204_v49, 4 }
 0x1f9   :  { %v3231_v23 = vsel %vm184_vm1, 0.0, %v3207_v11  ;;  %v847_v5 = vsel %vm184_vm1, %v846_v54, %v2970_v51  ;;  %v837_v34 = vsel %vm184_vm1, %v2996_v18, %v836_v63  ;;  %v849_v9 = vsel %vm184_vm1, %v2985_v45, %v848_v24 }
 0x1fa   :  { %v1075_v16 = vsel %vm184_vm1, 0.0, %v3212_v39  ;;  %v853_v53 = vperm.slane %v847_v5, %v2775_v6  ;;  %v3243_v56 = vperm.slane %v837_v34, %v2775_v6  ;;  %v3246_v10 = vperm.slane %v849_v9, %v2775_v6 }
 0x1fb   :  { %v807_v51 = vsel %vm184_vm1, %v2860_v19, %v806_v30  ;;  %v860_v25 = vrot.slane %v841_v57, 4  ;;  %v3665_v18 = vrot.slane %v3067_v58, 4  ;;  %v350_v45 = vsel %vm184_vm1, %v3063_v21, %v3067_v58 }
 0x1fc   :  { %v858_v31 = vrot.slane %v853_v53, 4  ;;  %v864_v17 = vrot.slane %v3243_v56, 4  ;;  %v354_v36 = vperm.slane %v350_v45, %v2767_v55  ;;  %v365_v24 = vperm.slane %v3094_v33, %v2767_v55 }
 0x1fd   :  { %v289_v59 = vsel %vm184_vm1, 0.0, %v3665_v18  ;;  %v861_v19 = vsel %vm184_vm1, %v853_v53, %v860_v25  ;;  %v371_v30 = vperm.slane %v367_v48, %v2767_v55  ;;  %v3666_v42 = vrot.slane %v2854_v14, 4 }
 0x1fe   :  { %v356_v54 = vsel %vm184_vm1, %v355_v35, %v289_v59  ;;  %v859_v21 = vsel %vm184_vm1, %v858_v31, %v841_v57  ;;  %v865_v58 = vsel %vm184_vm1, %v3246_v10, %v864_v17  ;;  %2311 = vmatpush.xpose.msk.msrb.mxu1 %vm1408_vm2, %v861_v19  ;;  %v374_v5 = vrot.slane %v354_v36, 4 }
 0x1ff   :  { %v360_v63 = vperm.slane %v356_v54, %v2767_v55  ;;  %v811_v35 = vsel %vm184_vm1, %v2849_v8, %v3666_v42  ;;  %2305 = vmatpush.xpose.msk.msra.mxu3 %vm1408_vm2, %v859_v21  ;;  %2323 = vmatpush.xpose.msk.msrb.mxu2 %vm1408_vm2, %v865_v58  ;;  %v384_v34 = vrot.slane %v371_v30, 4  ;;  %v386_v48 = vrot.slane %v365_v24, 4 }
 0x200   :  { %v752_v57 = vrot.slane %v2906_v0, 4  ;;  %v1072_v9 = vrot.slane %v3225_v47, 4  ;;  %v1251_v53 = vrot.slane %v1075_v16, 4  ;;  %v756_v8 = vrot.slane %v2883_v44, 4 }
 0x201   :  { %v372_v33 = vrot.slane %v360_v63, 4  ;;  %v375_v14 = vsel %vm184_vm1, %v360_v63, %v374_v5  ;;  %v385_v18 = vsel %vm184_vm1, %v384_v34, %v365_v24  ;;  %v387_v0 = vsel %vm184_vm1, %v371_v30, %v386_v48 }
 0x202   :  { %2319 = vmatpush.xpose.msk.msra.mxu1 %vm1408_vm2, %v811_v35  ;;  %v3285_v59 = vperm.slane %v375_v14, %v2775_v6  ;;  %v1077_v45 = vsel %vm184_vm1, 0.0, %v1076_v7  ;;  %v1262_v16 = vrot.slane %v3231_v23, 4  ;;  %v391_v31 = vperm.slane %v385_v18, %v2775_v6 }
 0x203   :  { %2307 = vmatpush.xpose.msk.msrb.mxu3 %vm1408_vm2, %v807_v51  ;;  %v373_v25 = vsel %vm184_vm1, %v372_v33, %v354_v36  ;;  %v3293_v17 = vperm.slane %v387_v0, %v2775_v6  ;;  %v753_v36 = vsel %vm184_vm1, %v2865_v28, %v752_v57  ;;  %v757_v54 = vsel %vm184_vm1, %v2845_v4, %v756_v8 }
 0x204   :  { %v379_v51 = vperm.slane %v373_v25, %v2775_v6  ;;  %v402_v44 = vrot.slane %v3285_v59, 4  ;;  %v396_v19 = vrot.slane %v391_v31, 4  ;;  %v862_v23 = vrot.slane %v3246_v10, 4 }
 0x205   :  { %v1073_v63 = vsel %vm184_vm1, 0.0, %v1072_v9  ;;  %v1021_v24 = vsel %vm184_vm1, 0.0, %v1020_v52  ;;  %v1208_v30 = vrot.slane %v3222_v43, 4  ;;  %v917_v10 = vsel %vm184_vm1, %v916_v1, %v3139_v2 }
 0x206   :  { %v398_v7 = vrot.slane %v379_v51, 4  ;;  %2320 = vmatpush.xpose.msk.msra.mxu1 %vm1408_vm2, %v757_v54  ;;  %v403_v28 = vsel %vm184_vm1, %v3293_v17, %v402_v44  ;;  %v1252_v4 = vsel %vm184_vm1, %v1251_v53, %v1073_v63  ;;  %v397_v21 = vsel %vm184_vm1, %v396_v19, %v379_v51 }
 0x207   :  { %2308 = vmatpush.xpose.msk.msrb.mxu3 %vm1408_vm2, %v753_v36  ;;  %2324 = vmatmul.msk.f32.vlgmr.msrb.gmra.mxu2 %vm1408_vm2, %v403_v28  ;;  %v1246_v52 = vsel %vm184_vm1, %v3212_v39, %v3225_v47  ;;  %v1256_v43 = vperm.slane %v1252_v4, %v2767_v55  ;;  %v1257_v42 = vsel %vm184_vm1, %v3207_v11, %v3200_v60  ;;  %v1017_v2 = vsel %vm184_vm1, 0.0, %v1016_v15 }
 0x208   :  { %v399_v58 = vsel %vm184_vm1, %v391_v31, %v398_v7  ;;  %2306 = vmatmul.msk.f32.vlgmr.msra.gmra.mxu3 %vm1408_vm2, %v397_v21  ;;  %v1263_v35 = vsel %vm184_vm1, %v1262_v16, %v1077_v45  ;;  %v863_v22 = vsel %vm184_vm1, %v862_v23, %v3243_v56  ;;  %v1192_v39 = vsel %vm184_vm1, %v3174_v46, %v3183_v40 }
 0x209   :  { %2312 = vmatmul.msk.f32.vlgmr.msrb.gmra.mxu1 %vm1408_vm2, %v399_v58  ;;  %v1267_v1 = vperm.slane %v1263_v35, %v2767_v55  ;;  %v1198_v60 = vsel %vm184_vm1, %v1197_v29, %v1017_v2  ;;  %v344_v11 = vrot.slane %v3106_v12, 4  ;;  %v1250_v47 = vperm.slane %v1246_v52, %v2767_v55 }
 0x20a   :  { %v1268_v15 = vrot.slane %v1256_v43, 4  ;;  %v1202_v5 = vperm.slane %v1198_v60, %v2767_v55  ;;  %v1261_v33 = vperm.slane %v1257_v42, %v2767_v55  ;;  %v1203_v34 = vsel %vm184_vm1, %v3196_v61, %v3186_v3 }
 0x20b   :  { %2316 = vmatpush.xpose.msk.msra.mxu3 %vm1408_vm2, %v917_v10  ;;  %v1280_v56 = vrot.slane %v1267_v1, 4  ;;  %v1209_v46 = vsel %vm184_vm1, %v1208_v30, %v1021_v24  ;;  %v1196_v49 = vperm.slane %v1192_v39, %v2767_v55  ;;  %v1207_v53 = vperm.slane %v1203_v34, %v2767_v55 }
 0x20c   :  { %v1269_v40 = vsel %vm184_vm1, %v1268_v15, %v1250_v47  ;;  %v1213_v12 = vperm.slane %v1209_v46, %v2767_v55  ;;  %v1214_v29 = vrot.slane %v1202_v5, 4  ;;  %v345_v14 = vsel %vm184_vm1, %v3109_v27, %v344_v11 }
 0x20d   :  { %v1275_v48 = vperm.slane %v1269_v40, %v2775_v6  ;;  %v1281_v57 = vsel %vm184_vm1, %v1280_v56, %v1261_v33  ;;  %v349_v8 = vsel %vm184_vm1, %v3085_v62, %v348_v50  ;;  %v400_v62 = vrot.slane %v3293_v17, 4 }
 0x20e   :  { %v1287_v9 = vperm.slane %v1281_v57, %v2775_v6  ;;  %v1215_v3 = vsel %vm184_vm1, %v1214_v29, %v1196_v49  ;;  %v1226_v61 = vrot.slane %v1213_v12, 4  ;;  %v1282_v54 = vrot.slane %v1261_v33, 4 }
 0x20f   :  { %2317 = vmatpush.xpose.msk.msra.mxu3 %vm1408_vm2, %v863_v22  ;;  %v1221_v25 = vperm.slane %v1215_v3, %v2775_v6  ;;  %v1294_v18 = vrot.slane %v1275_v48, 4  ;;  %v401_v36 = vsel %vm184_vm1, %v400_v62, %v3285_v59  ;;  %v1228_v19 = vrot.slane %v1207_v53, 4 }
 0x210   :  { %2309 = vmatmul.msk.f32.vlgmr.msrb.gmra.mxu3 %vm1408_vm2, %v345_v14  ;;  %v1292_v0 = vrot.slane %v1287_v9, 4  ;;  %v1227_v45 = vsel %vm184_vm1, %v1226_v61, %v1207_v53  ;;  %v1270_v7 = vrot.slane %v1250_v47, 4  ;;  %v1216_v23 = vrot.slane %v1196_v49, 4 }
 0x211   :  { %2321 = vmatmul.msk.f32.vlgmr.msra.gmra.mxu1 %vm1408_vm2, %v349_v8  ;;  %v1233_v16 = vperm.slane %v1227_v45, %v2775_v6  ;;  %v1295_v51 = vsel %vm184_vm1, %v1287_v9, %v1294_v18  ;;  %v1240_v27 = vrot.slane %v1221_v25, 4  ;;  %v1283_v63 = vsel %vm184_vm1, %v1267_v1, %v1282_v54 }
 0x212   :  { %v1293_v13 = vsel %vm184_vm1, %v1292_v0, %v1275_v48  ;;  %1793 = vmatpush.msra.mxu2 %v1295_v51  ;;  %v1229_v17 = vsel %vm184_vm1, %v1213_v12, %v1228_v19  ;;  %v1291_v24 = vperm.slane %v1283_v63, %v2775_v6  ;;  %v1271_v28 = vsel %vm184_vm1, %v1256_v43, %v1270_v7 }
 0x213   :  { %1747 = vmatpush.msrb.mxu3 %v1293_v13  ;;  %v1238_v50 = vrot.slane %v1233_v16, 4  ;;  %v1241_v31 = vsel %vm184_vm1, %v1233_v16, %v1240_v27  ;;  %v1237_v30 = vperm.slane %v1229_v17, %v2775_v6  ;;  %v1217_v4 = vsel %vm184_vm1, %v1202_v5, %v1216_v23 }
 0x214   :  { %1794 = vmatpush.msra.mxu2 %v1241_v31  ;;  %v1279_v59 = vperm.slane %v1271_v28, %v2775_v6  ;;  %v1296_v21 = vrot.slane %v1291_v24, 4  ;;  %v1225_v58 = vperm.slane %v1217_v4, %v2775_v6  ;;  %v3667_v57 = vpack.i.bf16 %v2720_v32, %v2713_v26  ;;  %v3420_v32 = vpop.permute.xlu2 %2376 }
 0x215   :  { %v1239_v44 = vsel %vm184_vm1, %v1238_v50, %v1221_v25  ;;  %v1242_v10 = vrot.slane %v1237_v30, 4  ;;  %v3668_v9 = vpack.i.bf16 %v2730_v37, %v2732_v38  ;;  %v2385_v53 = vpack.i.bf16 %v2740_v41, %v2692_v20 }
 0x216   :  { %1748 = vmatpush.msrb.mxu3 %v1239_v44  ;;  %v3386_v52 = vsel %vm184_vm1, %v1296_v21, %v1279_v59  ;;  %v1298_v35 = vrot.slane %v1279_v59, 4  ;;  %v1244_v2 = vrot.slane %v1225_v58, 4 }
 0x217   :  { %v3389_v42 = vsel %vm184_vm1, %v1242_v10, %v1225_v58 }
 0x218   :  { %2318 = vmatmul.msk.f32.vlgmr.msra.gmra.mxu3 %vm1408_vm2, %v401_v36  ;;  %v3392_v22 = vsel %vm184_vm1, %v1291_v24, %v1298_v35  ;;  %v3395_v43 = vsel %vm184_vm1, %v1237_v30, %v1244_v2 }
 0x265   :  { %v1435_v1 = vpop.f32.mrf.mxu1 }
 0x266   :  { %v1642_v39 = vsel %vm1641_vm3, %v1435_v1, -inf }
 0x267   :  { %1643 = vmax.xlane.f32.xlu1 %v1642_v39  ;;  %v1551_v60 = vpop.f32.mrf.mxu2  ;;  %v2378_v39 = vunpack.i.l.bf16 %v3420_v32 }
 0x268   :  { %v1654_v11 = vsel %vm1641_vm3, %v1551_v60, -inf }
 0x269   :  { %1655 = vmax.xlane.f32.xlu2 %v1654_v11  ;;  %v2379_v11 = vunpack.i.h.bf16 %v3420_v32 }
 0x286   :  { %v1522_v47 = vpop.f32.mrf.mxu1 }
 0x287   :  { %v1651_v15 = vsel %vm1641_vm3, %v1522_v47, -inf }
 0x288   :  { %1652 = vmax.xlane.f32.xlu2 %v1651_v15 }
 0x28a   :  { %v1638_v5 = vpop.f32.mrf.mxu2 }
 0x28b   :  { %v1464_v33 = vpop.f32.mrf.mxu3  ;;  %v1663_v56 = vsel %vm1641_vm3, %v1638_v5, -inf }
 0x28c   :  { %v1645_v34 = vsel %vm1641_vm3, %v1464_v33, -inf  ;;  %1664 = vmax.xlane.f32.xlu1 %v1663_v56  ;;  %v1136_v56 = vrot.slane %v2378_v39, 4 }
 0x28d   :  { %1646 = vmax.xlane.f32.xlu0 %v1645_v34 }
 0x28e   :  { %v1609_v46 = vpop.f32.mrf.mxu1 }
 0x28f   :  { %v1660_v49 = vsel %vm1641_vm3, %v1609_v46, -inf }
 0x293   :  { %v1493_v40 = vpop.f32.mrf.mxu3 }
 0x294   :  { %v1648_v12 = vsel %vm1641_vm3, %v1493_v40, -inf  ;;  %1661 = vmax.xlane.f32.xlu1 %v1660_v49 }
 0x295   :  { %1649 = vmax.xlane.f32.xlu2 %v1648_v12 }
 0x29b   :  { %v1580_v29 = vpop.f32.mrf.mxu3 }
 0x29c   :  { %v1657_v48 = vsel %vm1641_vm3, %v1580_v29, -inf }
 0x29d   :  { %1658 = vmax.xlane.f32.xlu0 %v1657_v48  ;;  %v1137_v48 = vsel %vm184_vm1, %v1136_v56, %v2379_v11 }
 0x2ad   :  { %2391 = vrot.lane.b32.xlu2 %v3667_v57, %s2607_s19  ;;  %2381 = vrot.lane.b32.xlu1 %v3668_v9, %s2607_s19 }
 0x2b1   :  { %2386 = vrot.lane.b32.xlu0 %v2385_v53, %s2607_s19 }
 0x2da   :  { %v1644_v3 = vpop.xlane.xlu1 %1643 }
 0x2db   :  { %v1666_v61 = vsub.f32 %v1435_v1, %v1644_v3 }
 0x2dc   :  { %v1656_v25 = vpop.xlane.xlu2 %1655 }
 0x2dd   :  { %v1674_v14 = vmul.f32 1.442695, %v1666_v61  ;;  %v1670_v45 = vsub.f32 %v1551_v60, %v1656_v25 }
 0x2df   :  { %2402 = vpow2.f32 %v1674_v14  ;;  %v1682_v13 = vmul.f32 1.442695, %v1670_v45 }
 0x2e5   :  { %v3416_v8 = vpop.eup %2402 }
 0x2e6   :  { %v1690_v26 = vsel %vm1641_vm3, %v3416_v8, 0.0 }
 0x2e7   :  { %1691 = vadd.xlane.f32.xlu1 %v1690_v26  ;;  %v1143_v26 = vperm.slane %v1137_v48, %v2767_v55 }
 0x2fb   :  { %v1653_v37 = vpop.xlane.xlu2 %1652 }
 0x2fc   :  { %v1669_v38 = vsub.f32 %v1522_v47, %v1653_v37 }
 0x2fe   :  { %v1680_v18 = vmul.f32 1.442695, %v1669_v38 }
 0x2ff   :  { %v1665_v20 = vpop.xlane.xlu1 %1664 }
 0x300   :  { %2404 = vpow2.f32 %v1680_v18  ;;  %v1647_v41 = vpop.xlane.xlu0 %1646  ;;  %v1673_v36 = vsub.f32 %v1638_v5, %v1665_v20 }
 0x301   :  { %v1667_v0 = vsub.f32 %v1464_v33, %v1647_v41 }
 0x302   :  { %v1688_v63 = vmul.f32 1.442695, %v1673_v36 }
 0x303   :  { %v1676_v16 = vmul.f32 1.442695, %v1667_v0 }
 0x305   :  { %2406 = vpow2.f32 %v1676_v16 }
 0x306   :  { %v3422_v51 = vpop.eup %2404  ;;  %2408 = vpow2.f32 %v1682_v13  ;;  %v1162_v13 = vrot.slane %v1143_v26, 4 }
 0x307   :  { %v1699_v27 = vsel %vm1641_vm3, %v3422_v51, 0.0  ;;  %v1662_v62 = vpop.xlane.xlu1 %1661 }
 0x308   :  { %1700 = vadd.xlane.f32.xlu0 %v1699_v27  ;;  %v1650_v50 = vpop.xlane.xlu2 %1649  ;;  %v1672_v31 = vsub.f32 %v1609_v46, %v1662_v62  ;;  %v1138_v46 = vrot.slane %v2379_v11, 4 }
 0x309   :  { %v1668_v44 = vsub.f32 %v1493_v40, %v1650_v50 }
 0x30a   :  { %v1686_v54 = vmul.f32 1.442695, %v1672_v31  ;;  %v1139_v9 = vsel %vm184_vm1, %v2378_v39, %v1138_v46 }
 0x30b   :  { %v3426_v19 = vpop.eup %2406  ;;  %v1678_v7 = vmul.f32 1.442695, %v1668_v44  ;;  %v1147_v38 = vperm.slane %v1139_v9, %v2767_v55 }
 0x30c   :  { %2410 = vpow2.f32 %v1686_v54  ;;  %v1693_v23 = vsel %vm1641_vm3, %v3426_v19, 0.0  ;;  %v3430_v24 = vpop.eup %2408 }
 0x30d   :  { %2412 = vpow2.f32 %v1678_v7  ;;  %1694 = vadd.xlane.f32.xlu2 %v1693_v23  ;;  %v1702_v58 = vsel %vm1641_vm3, %v3430_v24, 0.0  ;;  %v1174_v23 = vrot.slane %v1147_v38, 4 }
 0x30e   :  { %2414 = vpow2.f32 %v1688_v63 }
 0x310   :  { %v1659_v17 = vpop.xlane.xlu0 %1658  ;;  %v2392_v35 = vpop.permute.xlu2 %2391 }
 0x311   :  { %v1671_v30 = vsub.f32 %v1580_v29, %v1659_v17  ;;  %v2393_v1 = vunpack.i.l.bf16 %v2392_v35  ;;  %v2394_v60 = vunpack.i.h.bf16 %v2392_v35 }
 0x312   :  { %v3432_v28 = vpop.eup %2410 }
 0x313   :  { %v3434_v4 = vpop.eup %2412  ;;  %v1684_v59 = vmul.f32 1.442695, %v1671_v30  ;;  %v1708_v21 = vsel %vm1641_vm3, %v3432_v28, 0.0  ;;  %v1092_v5 = vrot.slane %v2393_v1, 4  ;;  %v1094_v34 = vrot.slane %v2394_v60, 4 }
 0x314   :  { %v1696_v10 = vsel %vm1641_vm3, %v3434_v4, 0.0  ;;  %1709 = vadd.xlane.f32.xlu0 %v1708_v21  ;;  %v3442_v2 = vpop.eup %2414 }
 0x315   :  { %2416 = vpow2.f32 %v1684_v59  ;;  %1703 = vadd.xlane.f32.xlu2 %v1702_v58  ;;  %1697 = vadd.xlane.f32.xlu1 %v1696_v10  ;;  %v1711_v15 = vsel %vm1641_vm3, %v3442_v2, 0.0  ;;  %v1093_v49 = vsel %vm184_vm1, %v1092_v5, %v2394_v60  ;;  %v1095_v57 = vsel %vm184_vm1, %v2393_v1, %v1094_v34 }
 0x316   :  { %v1099_v61 = vperm.slane %v1093_v49, %v2767_v55  ;;  %v1103_v32 = vperm.slane %v1095_v57, %v2767_v55 }
 0x318   :  { %v1104_v45 = vrot.slane %v1099_v61, 4  ;;  %v1116_v62 = vrot.slane %v1103_v32, 4 }
 0x31b   :  { %v3446_v47 = vpop.eup %2416 }
 0x31c   :  { %v1705_v33 = vsel %vm1641_vm3, %v3446_v47, 0.0  ;;  %1712 = vadd.xlane.f32.xlu0 %v1711_v15 }
 0x31d   :  { %1706 = vadd.xlane.f32.xlu1 %v1705_v33 }
 0x31f   :  { %v2382_v40 = vpop.permute.xlu1 %2381 }
 0x320   :  { %v2384_v12 = vunpack.i.h.bf16 %v2382_v40  ;;  %v2383_v29 = vunpack.i.l.bf16 %v2382_v40 }
 0x322   :  { %v1148_v53 = vrot.slane %v2384_v12, 4  ;;  %v1080_v3 = vrot.slane %v2383_v29, 4 }
 0x323   :  { %v2387_v14 = vpop.permute.xlu0 %2386 }
 0x324   :  { %v2389_v25 = vunpack.i.h.bf16 %v2387_v14  ;;  %v2388_v37 = vunpack.i.l.bf16 %v2387_v14 }
 0x326   :  { %v1150_v18 = vrot.slane %v2389_v25, 4  ;;  %v1081_v20 = vsel %vm184_vm1, %v1080_v3, %v2388_v37  ;;  %v1082_v41 = vrot.slane %v2388_v37, 4  ;;  %v1149_v0 = vsel %vm184_vm1, %v1148_v53, %v2389_v25 }
 0x327   :  { %v1087_v16 = vperm.slane %v1081_v20, %v2767_v55  ;;  %v1155_v27 = vperm.slane %v1149_v0, %v2767_v55 }
 0x328   :  { %v1083_v50 = vsel %vm184_vm1, %v2383_v29, %v1082_v41  ;;  %v1151_v31 = vsel %vm184_vm1, %v2384_v12, %v1150_v18 }
 0x329   :  { %v1091_v44 = vperm.slane %v1083_v50, %v2767_v55  ;;  %v1105_v36 = vsel %vm184_vm1, %v1104_v45, %v1087_v16  ;;  %v1106_v54 = vrot.slane %v1087_v16, 4  ;;  %v1159_v7 = vperm.slane %v1151_v31, %v2767_v55 }
 0x32a   :  { %v1111_v63 = vperm.slane %v1105_v36, %v2775_v6  ;;  %v1160_v17 = vrot.slane %v1155_v27, 4  ;;  %v1163_v30 = vsel %vm184_vm1, %v1155_v27, %v1162_v13 }
 0x32b   :  { %v1107_v59 = vsel %vm184_vm1, %v1099_v61, %v1106_v54  ;;  %v1117_v21 = vsel %vm184_vm1, %v1116_v62, %v1091_v44  ;;  %v1118_v58 = vrot.slane %v1091_v44, 4  ;;  %v1171_v10 = vperm.slane %v1163_v30, %v2775_v6 }
 0x32c   :  { %v1115_v35 = vperm.slane %v1107_v59, %v2775_v6  ;;  %v1123_v1 = vperm.slane %v1117_v21, %v2775_v6  ;;  %v1128_v39 = vrot.slane %v1111_v63, 4  ;;  %v1161_v60 = vsel %vm184_vm1, %v1160_v17, %v1143_v26 }
 0x32d   :  { %v1119_v11 = vsel %vm184_vm1, %v1103_v32, %v1118_v58  ;;  %v1167_v15 = vperm.slane %v1161_v60, %v2775_v6  ;;  %v1172_v5 = vrot.slane %v1159_v7, 4  ;;  %v1175_v33 = vsel %vm184_vm1, %v1159_v7, %v1174_v23 }
 0x32e   :  { %v1127_v56 = vperm.slane %v1119_v11, %v2775_v6  ;;  %v1129_v34 = vsel %vm184_vm1, 0.0, %v1128_v39  ;;  %v1130_v46 = vrot.slane %v1115_v35, 4  ;;  %v1183_v49 = vperm.slane %v1175_v33, %v2775_v6 }
 0x32f   :  { %v1173_v40 = vsel %vm184_vm1, %v1172_v5, %v1147_v38  ;;  %v1184_v12 = vrot.slane %v1167_v15, 4  ;;  %v1186_v29 = vrot.slane %v1171_v10, 4  ;;  %v1132_v57 = vrot.slane %v1123_v1, 4 }
 0x330   :  { %v1131_v48 = vsel %vm184_vm1, 0.0, %v1130_v46  ;;  %v1179_v9 = vperm.slane %v1173_v40, %v2775_v6  ;;  %v1134_v53 = vrot.slane %v1127_v56, 4  ;;  %v1190_v14 = vrot.slane %v1183_v49, 4 }
 0x331   :  { %v1185_v3 = vsel %vm184_vm1, 0.0, %v1184_v12  ;;  %v1187_v61 = vsel %vm184_vm1, 0.0, %v1186_v29  ;;  %v1305_v26 = vrot.slane %v1131_v48, 4  ;;  %v1354_v37 = vsel %vm184_vm1, %v1186_v29, %v1167_v15 }
 0x332   :  { %v1188_v32 = vrot.slane %v1179_v9, 4  ;;  %v1359_v25 = vrot.slane %v1187_v61, 4  ;;  %v1135_v38 = vsel %vm184_vm1, 0.0, %v1134_v53  ;;  %v1191_v18 = vsel %vm184_vm1, 0.0, %v1190_v14 }
 0x333   :  { %v1358_v20 = vperm.slane %v1354_v37, %v2767_v55  ;;  %v1365_v41 = vsel %vm184_vm1, %v1190_v14, %v1179_v9  ;;  %v1300_v0 = vsel %vm184_vm1, %v1130_v46, %v1111_v63  ;;  %v1370_v45 = vrot.slane %v1191_v18, 4 }
 0x334   :  { %v1189_v16 = vsel %vm184_vm1, 0.0, %v1188_v32  ;;  %v1360_v27 = vsel %vm184_vm1, %v1359_v25, %v1185_v3  ;;  %v1369_v13 = vperm.slane %v1365_v41, %v2767_v55  ;;  %v1304_v31 = vperm.slane %v1300_v0, %v2767_v55 }
 0x335   :  { %v1364_v62 = vperm.slane %v1360_v27, %v2767_v55  ;;  %v1378_v50 = vrot.slane %v1358_v20, 4  ;;  %v1306_v44 = vsel %vm184_vm1, %v1305_v26, %v1129_v34  ;;  %v1371_v36 = vsel %vm184_vm1, %v1370_v45, %v1189_v16 }
 0x336   :  { %v1390_v54 = vrot.slane %v1369_v13, 4  ;;  %v1310_v7 = vperm.slane %v1306_v44, %v2767_v55  ;;  %v1311_v23 = vsel %vm184_vm1, %v1134_v53, %v1123_v1  ;;  %v1375_v63 = vperm.slane %v1371_v36, %v2767_v55 }
 0x337   :  { %v1376_v17 = vrot.slane %v1364_v62, 4  ;;  %v1133_v30 = vsel %vm184_vm1, 0.0, %v1132_v57  ;;  %v1315_v59 = vperm.slane %v1311_v23, %v2767_v55  ;;  %v1379_v21 = vsel %vm184_vm1, %v1364_v62, %v1378_v50 }
 0x338   :  { %v1316_v58 = vrot.slane %v1135_v38, 4  ;;  %v1322_v10 = vrot.slane %v1310_v7, 4  ;;  %v1324_v35 = vrot.slane %v1304_v31, 4  ;;  %v1388_v60 = vrot.slane %v1375_v63, 4 }
 0x339   :  { %v1377_v39 = vsel %vm184_vm1, %v1376_v17, %v1358_v20  ;;  %v1391_v11 = vsel %vm184_vm1, %v1375_v63, %v1390_v54  ;;  %v1336_v15 = vrot.slane %v1315_v59, 4  ;;  %v1387_v29 = vperm.slane %v1379_v21, %v2775_v6 }
 0x33a   :  { %v1383_v1 = vperm.slane %v1377_v39, %v2775_v6  ;;  %v1399_v5 = vperm.slane %v1391_v11, %v2775_v6  ;;  %v1317_v33 = vsel %vm184_vm1, %v1316_v58, %v1133_v30  ;;  %v1323_v56 = vsel %vm184_vm1, %v1322_v10, %v1304_v31 }
 0x33b   :  { %v1389_v34 = vsel %vm184_vm1, %v1388_v60, %v1369_v13  ;;  %v1321_v46 = vperm.slane %v1317_v33, %v2767_v55  ;;  %v1329_v40 = vperm.slane %v1323_v56, %v2775_v6  ;;  %v1325_v53 = vsel %vm184_vm1, %v1310_v7, %v1324_v35 }
 0x33c   :  { %v1395_v49 = vperm.slane %v1389_v34, %v2775_v6  ;;  %v1402_v12 = vrot.slane %v1383_v1, 4  ;;  %v1404_v48 = vrot.slane %v1399_v5, 4  ;;  %v1333_v18 = vperm.slane %v1325_v53, %v2775_v6 }
 0x33d   :  { %v1334_v57 = vrot.slane %v1321_v46, 4  ;;  %v1348_v9 = vrot.slane %v1329_v40, 4  ;;  %v1337_v3 = vsel %vm184_vm1, %v1321_v46, %v1336_v15  ;;  %v1406_v27 = vrot.slane %v1387_v29, 4 }
 0x33e   :  { %v1403_v61 = vsel %vm184_vm1, %v1395_v49, %v1402_v12  ;;  %v1405_v14 = vsel %vm184_vm1, %v1404_v48, %v1387_v29  ;;  %v1400_v26 = vrot.slane %v1395_v49, 4  ;;  %v1345_v32 = vperm.slane %v1337_v3, %v2775_v6 }
 0x33f   :  { %1816 = vmatpush.msra.mxu3 %v1403_v61  ;;  %1862 = vmatpush.msrb.mxu2 %v1405_v14  ;;  %v1335_v25 = vsel %vm184_vm1, %v1334_v57, %v1315_v59  ;;  %v1407_v13 = vsel %vm184_vm1, %v1399_v5, %v1406_v27  ;;  %v1352_v62 = vrot.slane %v1333_v18, 4 }
 0x340   :  { %v1401_v37 = vsel %vm184_vm1, %v1400_v26, %v1383_v1  ;;  %v1341_v38 = vperm.slane %v1335_v25, %v2775_v6  ;;  %v1350_v20 = vrot.slane %v1345_v32, 4 }
 0x341   :  { %1770 = vmatpush.msrb.mxu1 %v1401_v37  ;;  %v1353_v50 = vsel %vm184_vm1, %v1345_v32, %v1352_v62 }
 0x342   :  { %v1349_v41 = vsel %vm184_vm1, %v1341_v38, %v1348_v9  ;;  %v1351_v0 = vsel %vm184_vm1, %v1350_v20, %v1333_v18  ;;  %v1346_v45 = vrot.slane %v1341_v38, 4 }
 0x343   :  { %1817 = vmatpush.msra.mxu3 %v1349_v41  ;;  %1863 = vmatpush.msrb.mxu2 %v1351_v0 }
 0x344   :  { %v1347_v16 = vsel %vm184_vm1, %v1346_v45, %v1329_v40 }
 0x345   :  { %1771 = vmatpush.msrb.mxu1 %v1347_v16 }
 0x347   :  { %1839 = vmatpush.msra.mxu1 %v3386_v52 }
 0x349   :  { %1840 = vmatpush.msra.mxu1 %v3389_v42 }
 0x35a   :  { %v1692_v31 = vpop.xlane.xlu1 %1691 }
 0x35b   :  { %2418 = vrcp.f32 %v1692_v31 }
 0x361   :  { %v2419_v44 = vpop.eup %2418 }
 0x362   :  { %v1722_v36 = vmul.f32 %v2419_v44, %v3416_v8 }
 0x364   :  { %2325 = vmatmul.msk.f32.vlgmr.msrb.gmra.mxu3 %vm1641_vm3, %v1722_v36 }
 0x365   :  { %1885 = vmatpush.msrb.mxu3 %v3392_v22 }
 0x367   :  { %1886 = vmatpush.msrb.mxu3 %v3395_v43 }
 0x37b   :  { %v1701_v52 = vpop.xlane.xlu0 %1700 }
 0x37c   :  { %2420 = vrcp.f32 %v1701_v52 }
 0x380   :  { %v1695_v42 = vpop.xlane.xlu2 %1694 }
 0x381   :  { %2422 = vrcp.f32 %v1695_v42 }
 0x382   :  { %v2421_v54 = vpop.eup %2420 }
 0x383   :  { %v1725_v7 = vmul.f32 %v2421_v54, %v3422_v51 }
 0x385   :  { %2328 = vmatmul.msk.f32.vlgmr.msra.gmra.mxu3 %vm1641_vm3, %v1725_v7 }
 0x387   :  { %v2423_v23 = vpop.eup %2422  ;;  %v1710_v63 = vpop.xlane.xlu0 %1709 }
 0x388   :  { %v1723_v17 = vmul.f32 %v2423_v23, %v3426_v19  ;;  %v1704_v8 = vpop.xlane.xlu2 %1703  ;;  %2424 = vrcp.f32 %v1710_v63  ;;  %v1698_v30 = vpop.xlane.xlu1 %1697 }
 0x389   :  { %2426 = vrcp.f32 %v1704_v8 }
 0x38a   :  { %2428 = vrcp.f32 %v1698_v30  ;;  %2326 = vmatmul.msk.f32.vlgmr.msrb.gmra.mxu1 %vm1641_vm3, %v1723_v17 }
 0x38b   :  { %1908 = vmatpush.msrb.mxu1 %v1407_v13 }
 0x38d   :  { %1909 = vmatpush.msrb.mxu1 %v1353_v50 }
 0x38e   :  { %v2425_v22 = vpop.eup %2424 }
 0x38f   :  { %v2427_v43 = vpop.eup %2426  ;;  %v1728_v59 = vmul.f32 %v2425_v22, %v3432_v28  ;;  %v1713_v51 = vpop.xlane.xlu0 %1712 }
 0x390   :  { %v2429_v21 = vpop.eup %2428  ;;  %v1726_v58 = vmul.f32 %v2427_v43, %v3430_v24  ;;  %2430 = vrcp.f32 %v1713_v51  ;;  %v1707_v10 = vpop.xlane.xlu1 %1706 }
 0x391   :  { %v1724_v19 = vmul.f32 %v2429_v21, %v3434_v4  ;;  %2432 = vrcp.f32 %v1707_v10  ;;  %2331 = vmatmul.msk.f32.vlgmr.msrb.gmra.mxu3 %vm1641_vm3, %v1728_v59 }
 0x392   :  { %2329 = vmatmul.msk.f32.vlgmr.msra.gmra.mxu1 %vm1641_vm3, %v1726_v58 }
 0x393   :  { %2327 = vmatmul.msk.f32.vlgmr.msra.gmra.mxu2 %vm1641_vm3, %v1724_v19 }
 0x396   :  { %v2431_v35 = vpop.eup %2430 }
 0x397   :  { %v2433_v39 = vpop.eup %2432  ;;  %v1729_v60 = vmul.f32 %v2431_v35, %v3442_v2 }
 0x398   :  { %v1727_v28 = vmul.f32 %v2433_v39, %v3446_v47 }
 0x39a   :  { %2332 = vmatmul.msk.f32.vlgmr.msrb.gmra.mxu1 %vm1641_vm3, %v1729_v60 }
 0x39b   :  { %2330 = vmatmul.msk.f32.vlgmr.msrb.gmra.mxu2 %vm1641_vm3, %v1727_v28 }
 0x3e7   :  { %v1750_v24 = vpop.f32.mrf.mxu3 }
 0x3e8   :  { %v1916_v1 = vrot.slane %v1750_v24, 4 }
 0x407   :  { %v1773_v11 = vpop.f32.mrf.mxu1 }
 0x408   :  { %v1819_v4 = vpop.f32.mrf.mxu3  ;;  %v1972_v62 = vrot.slane %v1773_v11, 4 }
 0x409   :  { %v1984_v40 = vrot.slane %v1819_v4, 4 }
 0x40f   :  { %v1842_v15 = vpop.f32.mrf.mxu1 }
 0x410   :  { %v1914_v5 = vrot.slane %v1842_v15, 4  ;;  %v1917_v56 = vsel %vm184_vm1, %v1842_v15, %v1916_v1 }
 0x411   :  { %v1925_v2 = vperm.slane %v1917_v56, %v2767_v55 }
 0x412   :  { %v1915_v33 = vsel %vm184_vm1, %v1914_v5, %v1750_v24 }
 0x413   :  { %v1921_v34 = vperm.slane %v1915_v33, %v2767_v55  ;;  %v1952_v61 = vrot.slane %v1925_v2, 4 }
 0x414   :  { %v1888_v46 = vpop.f32.mrf.mxu3 }
 0x415   :  { %v1926_v47 = vrot.slane %v1888_v46, 4  ;;  %v1940_v57 = vrot.slane %v1921_v34, 4 }
 0x416   :  { %v1796_v49 = vpop.f32.mrf.mxu2 }
 0x417   :  { %v1928_v12 = vrot.slane %v1796_v49, 4  ;;  %v1927_v29 = vsel %vm184_vm1, %v1926_v47, %v1796_v49  ;;  %v1911_v48 = vpop.f32.mrf.mxu1 }
 0x418   :  { %v1933_v9 = vperm.slane %v1927_v29, %v2767_v55  ;;  %v1982_v53 = vrot.slane %v1911_v48, 4  ;;  %v1985_v3 = vsel %vm184_vm1, %v1911_v48, %v1984_v40 }
 0x419   :  { %v1929_v14 = vsel %vm184_vm1, %v1888_v46, %v1928_v12  ;;  %v1993_v26 = vperm.slane %v1985_v3, %v2767_v55 }
 0x41a   :  { %v1937_v32 = vperm.slane %v1929_v14, %v2767_v55  ;;  %v1938_v25 = vrot.slane %v1933_v9, 4  ;;  %v1941_v37 = vsel %vm184_vm1, %v1933_v9, %v1940_v57  ;;  %v1983_v38 = vsel %vm184_vm1, %v1982_v53, %v1819_v4 }
 0x41b   :  { %v1949_v18 = vperm.slane %v1941_v37, %v2775_v6  ;;  %v1989_v20 = vperm.slane %v1983_v38, %v2767_v55  ;;  %v2006_v44 = vrot.slane %v1993_v26, 4 }
 0x41c   :  { %v1939_v41 = vsel %vm184_vm1, %v1938_v25, %v1921_v34  ;;  %v1950_v0 = vrot.slane %v1937_v32, 4  ;;  %v1953_v45 = vsel %vm184_vm1, %v1937_v32, %v1952_v61 }
 0x41d   :  { %v1945_v16 = vperm.slane %v1939_v41, %v2775_v6  ;;  %v1961_v27 = vperm.slane %v1953_v45, %v2775_v6  ;;  %v1964_v13 = vrot.slane %v1949_v18, 4  ;;  %v1994_v31 = vrot.slane %v1989_v20, 4 }
 0x41e   :  { %v1951_v50 = vsel %vm184_vm1, %v1950_v0, %v1925_v2  ;;  %v1865_v36 = vpop.f32.mrf.mxu2 }
 0x41f   :  { %v1957_v52 = vperm.slane %v1951_v50, %v2775_v6  ;;  %v1962_v42 = vrot.slane %v1945_v16, 4  ;;  %v1965_v54 = vsel %vm184_vm1, 0.0, %v1964_v13  ;;  %v1968_v7 = vrot.slane %v1961_v27, 4 }
 0x420   :  { %v2026_v23 = vsel %vm184_vm1, %v1964_v13, %v1945_v16  ;;  %v2031_v63 = vrot.slane %v1965_v54, 4  ;;  %v1970_v17 = vrot.slane %v1865_v36, 4  ;;  %v1973_v8 = vsel %vm184_vm1, %v1865_v36, %v1972_v62 }
 0x421   :  { %v1966_v30 = vrot.slane %v1957_v52, 4  ;;  %v1969_v22 = vsel %vm184_vm1, 0.0, %v1968_v7  ;;  %v2037_v43 = vsel %vm184_vm1, %v1968_v7, %v1957_v52  ;;  %v1981_v59 = vperm.slane %v1973_v8, %v2767_v55 }
 0x422   :  { %v2042_v51 = vrot.slane %v1969_v22, 4  ;;  %v1971_v21 = vsel %vm184_vm1, %v1970_v17, %v1773_v11  ;;  %v1963_v58 = vsel %vm184_vm1, 0.0, %v1962_v42  ;;  %v2030_v10 = vperm.slane %v2026_v23, %v2767_v55 }
 0x423   :  { %v1967_v19 = vsel %vm184_vm1, 0.0, %v1966_v30  ;;  %v1977_v35 = vperm.slane %v1971_v21, %v2767_v55  ;;  %v2007_v39 = vsel %vm184_vm1, %v2006_v44, %v1981_v59  ;;  %v2008_v60 = vrot.slane %v1981_v59, 4 }
 0x424   :  { %v2013_v28 = vperm.slane %v2007_v39, %v2775_v6  ;;  %v2032_v24 = vsel %vm184_vm1, %v2031_v63, %v1963_v58  ;;  %v2041_v4 = vperm.slane %v2037_v43, %v2767_v55  ;;  %v2043_v15 = vsel %vm184_vm1, %v2042_v51, %v1967_v19 }
 0x425   :  { %v1995_v11 = vsel %vm184_vm1, %v1994_v31, %v1977_v35  ;;  %v1996_v1 = vrot.slane %v1977_v35, 4  ;;  %v2009_v5 = vsel %vm184_vm1, %v1993_v26, %v2008_v60  ;;  %v2036_v33 = vperm.slane %v2032_v24, %v2767_v55 }
 0x426   :  { %v2001_v56 = vperm.slane %v1995_v11, %v2775_v6  ;;  %v2017_v34 = vperm.slane %v2009_v5, %v2775_v6  ;;  %v2022_v46 = vrot.slane %v2013_v28, 4  ;;  %v2047_v2 = vperm.slane %v2043_v15, %v2767_v55 }
 0x427   :  { %v1997_v47 = vsel %vm184_vm1, %v1989_v20, %v1996_v1  ;;  %v2050_v40 = vrot.slane %v2030_v10, 4  ;;  %v2062_v49 = vrot.slane %v2041_v4, 4  ;;  %v2048_v12 = vrot.slane %v2036_v33, 4 }
 0x428   :  { %v2005_v29 = vperm.slane %v1997_v47, %v2775_v6  ;;  %v2018_v48 = vrot.slane %v2001_v56, 4  ;;  %v2024_v57 = vrot.slane %v2017_v34, 4  ;;  %v2060_v61 = vrot.slane %v2047_v2, 4  ;;  %v2167_v34 = vld [vmem:[#allocation8 + $0x10] sm:$0xff] }
 0x429   :  { %v2051_v9 = vsel %vm184_vm1, %v2036_v33, %v2050_v40  ;;  %v2063_v53 = vsel %vm184_vm1, %v2047_v2, %v2062_v49  ;;  %v2049_v3 = vsel %vm184_vm1, %v2048_v12, %v2030_v10  ;;  %v2023_v37 = vsel %vm184_vm1, 0.0, %v2022_v46  ;;  %v2166_v46 = vld [vmem:[#allocation8 + $0x8] sm:$0xff]  ;;  %v2165_v2 = vld [vmem:[#allocation8] sm:$0xff] }
 0x42a   :  { %v2020_v14 = vrot.slane %v2005_v29, 4  ;;  %v2025_v26 = vsel %vm184_vm1, 0.0, %v2024_v57  ;;  %v2091_v32 = vsel %vm184_vm1, %v2024_v57, %v2013_v28  ;;  %v2059_v25 = vperm.slane %v2051_v9, %v2775_v6 }
 0x42b   :  { %v2096_v38 = vrot.slane %v2025_v26, 4  ;;  %v2071_v18 = vperm.slane %v2063_v53, %v2775_v6  ;;  %v2055_v20 = vperm.slane %v2049_v3, %v2775_v6  ;;  %v2095_v0 = vperm.slane %v2091_v32, %v2767_v55  ;;  %v2399_v26 = vld [vmem:[#allocation10 + $0x1] ss:$0 sm:$0xff]  ;;  %v2400_v32 = vld [vmem:[#allocation10 + $0x2] ss:$0 sm:$0xff] }
 0x42c   :  { %v2021_v41 = vsel %vm184_vm1, 0.0, %v2020_v14  ;;  %v2078_v45 = vrot.slane %v2059_v25, 4  ;;  %v2061_v16 = vsel %vm184_vm1, %v2060_v61, %v2041_v4  ;;  %v2080_v44 = vsel %vm184_vm1, %v2020_v14, %v2001_v56  ;;  %v2168_v56 = vld [vmem:[#allocation8 + $0x18] sm:$0xff]  ;;  %v2397_v14 = vld [vmem:[#allocation10 + $0x3] ss:$0 sm:$0xff] }
 0x42d   :  { %v2097_v27 = vsel %vm184_vm1, %v2096_v38, %v2023_v37  ;;  %v2076_v13 = vrot.slane %v2071_v18, 4  ;;  %v2067_v62 = vperm.slane %v2061_v16, %v2775_v6  ;;  %v2074_v50 = vrot.slane %v2055_v20, 4  ;;  %2189 = vmatpush.msra.mxu2 %v2168_v56  ;;  %v3640_v37 = vld [vmem:[#allocation2] sm:$0xff]  ;;  %v3644_v16 = vld [vmem:[#allocation2 + $0x8] sm:$0xff] }
 0x42e   :  { %v2079_v31 = vsel %vm184_vm1, %v2071_v18, %v2078_v45  ;;  %v2085_v36 = vrot.slane %v2021_v41, 4  ;;  %v2101_v52 = vperm.slane %v2097_v27, %v2767_v55  ;;  %v2019_v7 = vsel %vm184_vm1, 0.0, %v2018_v48 }
 0x42f   :  { %2152 = vrot.lane.b32.xlu0 %v2079_v31, %s2610_s20  ;;  %v2077_v42 = vsel %vm184_vm1, %v2076_v13, %v2059_v25  ;;  %v2075_v54 = vsel %vm184_vm1, %v2067_v62, %v2074_v50  ;;  %v2084_v23 = vperm.slane %v2080_v44, %v2767_v55  ;;  %v2116_v17 = vrot.slane %v2095_v0, 4  ;;  %2190 = vmatpush.msra.mxu2 %v2167_v34 }
 0x430   :  { %2144 = vrot.lane.b32.xlu1 %v2077_v42, %s2611_s21  ;;  %2136 = vrot.lane.b32.xlu2 %v2075_v54, %s2598_s27  ;;  %v2086_v63 = vsel %vm184_vm1, %v2085_v36, %v2019_v7  ;;  %v2114_v22 = vrot.slane %v2101_v52, 4  ;;  %v2072_v11 = vrot.slane %v2067_v62, 4  ;;  %v2207_v38 = vmul.f32 %v3640_v37, %v2397_v14  ;;  %v2401_v36 = vld [vmem:[#allocation10 + $0x4] ss:$0 sm:$0xff] }
 0x431   :  { %v2090_v8 = vperm.slane %v2086_v63, %v2767_v55  ;;  %v2104_v30 = vrot.slane %v2084_v23, 4  ;;  %v2117_v43 = vsel %vm184_vm1, %v2101_v52, %v2116_v17  ;;  %2191 = vmatpush.msra.mxu2 %v2166_v46  ;;  %v2208_v27 = vmul.f32 %v3644_v16, %v2397_v14 }
 0x432   :  { %v2125_v51 = vperm.slane %v2117_v43, %v2775_v6  ;;  %v2115_v35 = vsel %vm184_vm1, %v2114_v22, %v2095_v0  ;;  %v2073_v1 = vsel %vm184_vm1, %v2072_v11, %v2055_v20  ;;  %v2612_v44 = vmov 0  }
 0x433   :  { %v2105_v59 = vsel %vm184_vm1, %v2090_v8, %v2104_v30  ;;  %v2102_v21 = vrot.slane %v2090_v8, 4  ;;  %v2121_v24 = vperm.slane %v2115_v35, %v2775_v6  ;;  %2192 = vmatpush.msra.mxu2 %v2165_v2  ;;  %2395 = vset.pattern.permute.xlu1 %v2612_v44 }
 0x434   :  { %v2113_v58 = vperm.slane %v2105_v59, %v2775_v6  ;;  %v2130_v10 = vrot.slane %v2125_v51, 4  ;;  %2396 = vset.pattern.permute.xlu0 %v2612_v44 }
 0x435   :  { %v2103_v19 = vsel %vm184_vm1, %v2102_v21, %v2084_v23  ;;  %v2126_v5 = vrot.slane %v2121_v24, 4 }
 0x436   :  { %v2132_v39 = vrot.slane %v2113_v58, 4  ;;  %v2109_v60 = vperm.slane %v2103_v19, %v2775_v6  ;;  %v2131_v55 = vsel %vm184_vm1, %v2130_v10, %v2113_v58 }
 0x437   :  { %2146 = vrot.lane.b32.xlu0 %v2131_v55, %s2611_s21 }
 0x438   :  { %v2133_v28 = vsel %vm184_vm1, %v2125_v51, %v2132_v39  ;;  %v2128_v4 = vrot.slane %v2109_v60, 4  ;;  %v2127_v33 = vsel %vm184_vm1, %v2126_v5, %v2109_v60 }
 0x439   :  { %2154 = vrot.lane.b32.xlu1 %v2133_v28, %s2610_s20 }
 0x43a   :  { %v2129_v15 = vsel %vm184_vm1, %v2121_v24, %v2128_v4 }
 0x43b   :  { %2138 = vrot.lane.b32.xlu2 %v2129_v15, %s2598_s27 }
 0x48a   :  { %v2137_v6 = vpop.permute.xlu2 %2136 }
 0x48b   :  { %v2158_v40 = vsel %vm1408_vm2, %v2073_v1, %v2137_v6 }
 0x495   :  { %v2139_v48 = vpop.permute.xlu2 %2138 }
 0x496   :  { %v2159_v57 = vsel %vm1408_vm2, %v2127_v33, %v2139_v48 }
 0x4a1   :  { %v2153_v47 = vpop.permute.xlu0 %2152 }
 0x4a2   :  { %v2145_v49 = vpop.permute.xlu1 %2144 }
 0x4a3   :  { %v2160_v12 = vsel %vm1641_vm3, %v2158_v40, %v2145_v49 }
 0x4a4   :  { %v2163_v29 = vsel %vm2162_vm4, %v2160_v12, %v2153_v47 }
 0x4a5   :  { %2333 = vmatmul.msk.f32.vlgmr.msra.gmra.mxu2 %vm109_vm0, %v2163_v29 }
 0x4a9   :  { %v2147_v9 = vpop.permute.xlu0 %2146 }
 0x4aa   :  { %v2161_v53 = vsel %vm1641_vm3, %v2159_v57, %v2147_v9 }
 0x4ab   :  { %v2155_v3 = vpop.permute.xlu1 %2154 }
 0x4ac   :  { %v2164_v61 = vsel %vm2162_vm4, %v2161_v53, %v2155_v3 }
 0x4ad   :  { %2334 = vmatmul.msk.f32.gmra.mxu2 %vm109_vm0, %v2164_v61 }
 0x528   :  { %v2194_v25 = vpop.f32.mrf.mxu2 }
 0x529   :  { %v2195_v18 = vadd.f32 %v2399_v26, %v2194_v25 }
 0x52b   :  { %v2204_v20 = vmul.f32 %v2400_v32, %v2195_v18 }
 0x52d   :  { %v2209_v41 = vadd.f32 %v2207_v38, %v2204_v20 }
 0x52f   :  { %v2211_v0 = vsel %vm109_vm0, %v2209_v41, 0.0 }
 0x530   :  { %2212 = vadd.xlane.f32.xlu2 %v2211_v0  ;;  %v2197_v45 = vpop.f32.mrf.mxu2 }
 0x531   :  { %v2198_v13 = vadd.f32 %v2399_v26, %v2197_v45 }
 0x533   :  { %v2205_v62 = vmul.f32 %v2400_v32, %v2198_v13 }
 0x535   :  { %v2210_v50 = vadd.f32 %v2208_v27, %v2205_v62 }
 0x537   :  { %v2214_v31 = vsel %vm109_vm0, %v2210_v50, 0.0 }
 0x538   :  { %2215 = vadd.xlane.f32.xlu0 %v2214_v31 }
 0x5a3   :  { %v2213_v52 = vpop.xlane.xlu2 %2212 }
 0x5a4   :  { %v2218_v42 = vadd.f32 %v2401_v36, %v2213_v52 }
 0x5a6   :  { %v2335_v54 = vmul.f32 -1.442695, %v2218_v42 }
 0x5a8   :  { %2434 = vpow2.f32 %v2335_v54 }
 0x5ab   :  { %v2216_v7 = vpop.xlane.xlu0 %2215 }
 0x5ac   :  { %v2219_v23 = vadd.f32 %v2401_v36, %v2216_v7 }
 0x5ae   :  { %v2435_v63 = vpop.eup %2434  ;;  %v2336_v17 = vmul.f32 -1.442695, %v2219_v23 }
 0x5af   :  { %v2226_v8 = vadd.f32 1.0, %v2435_v63 }
 0x5b0   :  { %2436 = vpow2.f32 %v2336_v17 }
 0x5b1   :  { %2438 = vrcp.f32 %v2226_v8  ;;  %v2239_v21 = vand.u32 2147483648, %v2226_v8  ;;  %v2237_v10 = vand.u32 2147483647, %v2226_v8  ;;  %vm2233_vm6 = vweird.f32 %v2226_v8 }
 0x5b3   :  { %v2240_v39 = vor.u32 1.1754944e-38, %v2239_v21  ;;  %vm2238_vm8 = vcmp.eq.f32.partialorder %v2237_v10, 8.507059e+37 }
 0x5b6   :  { %v2437_v30 = vpop.eup %2436 }
 0x5b7   :  { %v2439_v22 = vpop.eup %2438  ;;  %v2227_v43 = vadd.f32 1.0, %v2437_v30 }
 0x5b8   :  { %v2229_v59 = vmul.f32 %v2439_v22, %v2226_v8  ;;  %vm2234_vm5 = vweird.f32 %v2439_v22 }
 0x5b9   :  { %2440 = vrcp.f32 %v2227_v43  ;;  %vm2235_vm7 = vmor %vm2233_vm6, %vm2234_vm5  ;;  %v2254_v4 = vand.u32 2147483648, %v2227_v43  ;;  %v2252_v11 = vand.u32 2147483647, %v2227_v43  ;;  %vm2248_vm10 = vweird.f32 %v2227_v43 }
 0x5ba   :  { %v2230_v51 = vsub.f32 1.0, %v2229_v59 }
 0x5bb   :  { %v2255_v5 = vor.u32 1.1754944e-38, %v2254_v4  ;;  %vm2253_vm12 = vcmp.eq.f32.partialorder %v2252_v11, 8.507059e+37 }
 0x5bc   :  { %v2231_v58 = vmul.f32 %v2439_v22, %v2230_v51 }
 0x5be   :  { %v2232_v19 = vadd.f32 %v2439_v22, %v2231_v58 }
 0x5bf   :  { %v2441_v35 = vpop.eup %2440 }
 0x5c0   :  { %v2236_v60 = vsel %vm2235_vm7, %v2439_v22, %v2232_v19  ;;  %v2244_v55 = vmul.f32 %v2441_v35, %v2227_v43  ;;  %vm2249_vm9 = vweird.f32 %v2441_v35 }
 0x5c1   :  { %v2241_v28 = vsel %vm2238_vm8, %v2240_v39, %v2236_v60  ;;  %vm2250_vm11 = vmor %vm2248_vm10, %vm2249_vm9 }
 0x5c2   :  { %2260 = vperm.xlu1 %2395, %v2241_v28   ;;  %v2245_v24 = vsub.f32 1.0, %v2244_v55 }
 0x5c4   :  { %v2246_v15 = vmul.f32 %v2441_v35, %v2245_v24 }
 0x5c6   :  { %v2247_v1 = vadd.f32 %v2441_v35, %v2246_v15 }
 0x5c8   :  { %v2251_v33 = vsel %vm2250_vm11, %v2441_v35, %v2247_v1 }
 0x5c9   :  { %v2256_v56 = vsel %vm2253_vm12, %v2255_v5, %v2251_v33 }
 0x5ca   :  { %2265 = vperm.xlu1 %2395, %v2256_v56  }
 0x634   :  { %v2261_v34 = vpop.permute.xlu1 %2260 }
 0x635   :  { %v2268_v46 = vmul.f32 %v2261_v34, %v2195_v18 }
 0x637   :  { %v2270_v2 = vadd.f32 %v3640_v37, %v2268_v46 }
 0x639   :  { %2272 = vst.msk [vmem:[#allocation11] sm:$0xff] %vm109_vm0, %v2270_v2 }
 0x63c   :  { %v2266_v6 = vpop.permute.xlu1 %2265 }
 0x63d   :  { %v2269_v47 = vmul.f32 %v2266_v6, %v2198_v13 }
 0x63f   :  { %v2271_v40 = vadd.f32 %v3644_v16, %v2269_v47 }
 0x641   :  { %2273 = vst.msk [vmem:[#allocation11 + $0x8] sm:$0xff] %vm109_vm0, %v2271_v40 }
 0x642   :  { %2286 = dma.vmem_to_hbm [thread:$0]  %s2279_s23, 256, %s2281_s28, [#allocation4], %s2597_s26, %s2597_s26, %s2598_s27  }
 0x643   :  { %2594 = dma.done.wait [#allocation4], 256  }
 0x644   :  { %2595 = vsyncadd [#allocation4], 4294967040 }
 0x645   :  { %2291 = vsyncpa [#allocation3], 1 }
 0x646   :  { %2292 = vsyncpa [#allocation6], 1 }
 0x647   :  { %2293 = vsyncpa [#allocation9], 1 }
 0x648   :  { %2294 = vsyncpa [#allocation4], 1 }

</bundles_post_ra>
